<compile_context>
chip_gen: v5e
topology: v5e:2x2
jax: 0.10.0
libtpu: 0.0.40
codegen_flags: <defaults>
</compile_context>

<pallas_src>
import functools
import math

import numpy as np

import jax
import jax.numpy as jnp
from jax.experimental import pallas as pl
from jax.experimental.pallas import tpu as pltpu

MATMUL_DTYPE = jnp.bfloat16     # matmul-input dtype; set to jnp.float32 for exact parity
_DILATIONS = (1, 3, 9, 27, 1)   # c1..c5
_NEG_SLOPE = 0.1


def _round_up(a, b):
    return -(-a // b) * b


# ----------------------------------------------------------------------------
# Fused Upsample kernel
# ----------------------------------------------------------------------------

def _upsample_kernel(src_cur, src_nxt, mc_ref, mn_ref,
                     w1, b1, w2, b2, wf1, bf1, w3, b3, w4, b4, wf2, bf2,
                     w5, b5, o_ref, *, tile_t, halo, cin):
    """One (time-tile, batch) step of the fused Upsample forward.

    src_cur/nxt : [1, Qb, Cin+Ccond]  original-resolution source slabs (bf16)
    mc/mn       : [W, Qb]             linear-interp weights (cur / next slab)
    w*/b*       : packed conv / FiLM weights (pre-cast; see pack_params)
    o_ref       : [1, tile_t, Cout]
    """
    f32 = jnp.float32
    mmd = MATMUL_DTYPE
    i = pl.program_id(0)

    # In-kernel linear interpolation (align_corners=False): one matmul per
    # (cur, next) slab; x and c are channel-concatenated -> one MXU LHS reuse.
    u = (jnp.dot(mc_ref[...], src_cur[0], preferred_element_type=f32)
         + jnp.dot(mn_ref[...], src_nxt[0], preferred_element_type=f32))  # [W, Cin+Ccond]
    ux = u[:, :cin]                    # upsampled x   [W, Cin]   (lane slice)
    uc = u[:, cin:]                    # upsampled c   [W, Ccond]
    uc_mm = uc.astype(mmd)             # hoisted: shared by both FiLM blocks

    w_rows = u.shape[0]
    # Rows of the window that lie before t=0 of the full upsampled sequence
    # (only non-trivial on the first time tile) -> causal zero padding.
    row = jax.lax.broadcasted_iota(jnp.int32, (w_rows, 1), 0)
    in_seq = (row + (i * tile_t - halo)) >= 0                 # [W, 1] bool

    def lrelu(v):
        return jnp.where(v >= 0, v, _NEG_SLOPE * v)

    def dcc(v, w_ref, b_ref, d):
        # Causal left zero-pad == zeroing out-of-sequence rows, then ONE matmul
        # [W,Cin] @ [Cin,3*Cout]; the dilation shifts are applied to the tap
        # OUTPUTS on the XLU (no [W,3*Cin] taps temp in VMEM).
        v = jnp.where(in_seq, v, 0.0)
        z = jnp.dot(v.astype(mmd), w_ref[...], preferred_element_type=f32)   # [W, 3*Cout]
        cout = z.shape[-1] // 3
        return (pltpu.roll(z[:, :cout], 2 * d, axis=0)          # w0 . x[t-2d]
                + pltpu.roll(z[:, cout:2 * cout], d, axis=0)    # w1 . x[t-d]
                + z[:, 2 * cout:]                               # w2 . x[t]
                + b_ref[...])

    def film_residual(v, wf_ref, bf_ref, res):
        # Both 1x1 convs of FiLM in one matmul: [W, Ccond] @ [Ccond, 2*C].
        musg = jnp.dot(uc_mm, wf_ref[...], preferred_element_type=f32) + bf_ref[...]
        ch = v.shape[-1]
        return v * musg[:, :ch] + musg[:, ch:] + res

    res = ux
    y = dcc(lrelu(ux), w1, b1, _DILATIONS[0])
    y = dcc(lrelu(y), w2, b2, _DILATIONS[1])
    y = film_residual(y, wf1, bf1, res)
    res = y
    y = dcc(lrelu(y), w3, b3, _DILATIONS[2])
    y = dcc(lrelu(y), w4, b4, _DILATIONS[3])
    y = film_residual(y, wf2, bf2, res)
    y = dcc(y, w5, b5, _DILATIONS[4])          # no leaky_relu before c5

    # Only the last `tile_t` rows of the window are this tile's output.
    o_ref[0] = y[halo:, :].astype(o_ref.dtype)


# ----------------------------------------------------------------------------
# Host-side helpers (static, run at trace time)
# ----------------------------------------------------------------------------

def _interp_matrix(w_rows, cols, factor):
    """[W, cols] matrix: ups_window = M @ source_slab (linear, align_corners=False)."""
    m = np.zeros((w_rows, cols), np.float32)
    for w in range(w_rows):
        q, p = divmod(w, factor)
        a = (p + 0.5) / factor - 0.5
        s = -1 if a < 0 else 0
        lam = a - s                      # fractional weight on the right sample
        m[w, q + s + 1] += 1.0 - lam
        m[w, q + s + 2] += lam
    return m


def _build_src(a, hq, total_len):
    """[zeros(hq) | a[0] | a | a[-1]*rep]  (left halo + edge-clamp replicates)."""
    b, t, ch = a.shape
    n_rep = total_len - (hq + 1 + t)
    parts = [jnp.zeros((b, hq, ch), a.dtype), a[:, :1, :], a]
    if n_rep > 0:
        parts.append(jnp.broadcast_to(a[:, -1:, :], (b, n_rep, ch)))
    return jnp.concatenate(parts, axis=1)


def _device_defaults():
    """(tile_t, vmem_limit_bytes) tuned per TPU generation."""
    vmem_cap = 128 * 1024 * 1024
    try:
        info = pltpu.get_tpu_info()
        vmem_cap = int(getattr(info, "vmem_capacity_bytes", vmem_cap))
    except Exception:
        pass
    if vmem_cap <= 64 * 1024 * 1024:       # v7x-class TC: 64 MiB physical VMEM
        return 512, min(52 * 1024 * 1024, (vmem_cap * 13) // 16)
    return 1024, min(100 * 1024 * 1024, (vmem_cap * 13) // 16)   # v5e / v6e


# ----------------------------------------------------------------------------
# Parameters
# ----------------------------------------------------------------------------

def init_params(key, in_ch, out_ch, cond_ch):
    """PyTorch-layout parameters (Conv1d weight [out, in, k], bias [out])."""
    ks = jax.random.split(key, 18)
    p = {}

    def conv_w(k, o, i, ksz):
        return 0.1 * jax.random.normal(k, (o, i, ksz), jnp.float32)

    def conv_b(k, o):
        return 0.05 * jax.random.normal(k, (o,), jnp.float32)

    p["c1_w"], p["c1_b"] = conv_w(ks[0], in_ch, in_ch, 3), conv_b(ks[1], in_ch)
    p["c2_w"], p["c2_b"] = conv_w(ks[2], in_ch, in_ch, 3), conv_b(ks[3], in_ch)
    p["c3_w"], p["c3_b"] = conv_w(ks[4], in_ch, in_ch, 3), conv_b(ks[5], in_ch)
    p["c4_w"], p["c4_b"] = conv_w(ks[6], in_ch, in_ch, 3), conv_b(ks[7], in_ch)
    p["c5_w"], p["c5_b"] = conv_w(ks[8], out_ch, in_ch, 3), conv_b(ks[9], out_ch)
    p["f1_mu_w"], p["f1_mu_b"] = conv_w(ks[10], in_ch, cond_ch, 1), conv_b(ks[11], in_ch)
    p["f1_sg_w"], p["f1_sg_b"] = conv_w(ks[12], in_ch, cond_ch, 1), conv_b(ks[13], in_ch)
    p["f2_mu_w"], p["f2_mu_b"] = conv_w(ks[14], in_ch, cond_ch, 1), conv_b(ks[15], in_ch)
    p["f2_sg_w"], p["f2_sg_b"] = conv_w(ks[16], in_ch, cond_ch, 1), conv_b(ks[17], in_ch)
    return p


def pack_params(p, matmul_dtype=None):
    """One-time repack + pre-cast into kernel layout (taps & FiLM convs fused)."""
    mmd = MATMUL_DTYPE if matmul_dtype is None else matmul_dtype

    def conv(w, b):
        cout, cin, k = w.shape
        # [Cout, Cin, K] -> [Cin, K*Cout], column = tap*Cout + out, so the
        # kernel can shift the three tap OUTPUTS instead of the inputs.
        wp = jnp.transpose(w, (1, 2, 0)).reshape(cin, k * cout).astype(mmd)
        return wp, b.reshape(1, cout).astype(jnp.float32)

    def film(wmu, bmu, wsg, bsg):
        wf = jnp.concatenate([wmu[:, :, 0].T, wsg[:, :, 0].T], axis=1).astype(mmd)
        bf = jnp.concatenate([bmu, bsg]).reshape(1, -1).astype(jnp.float32)
        return wf, bf

    packed = {}
    for name in ("c1", "c2", "c3", "c4", "c5"):
        packed[f"{name}_w"], packed[f"{name}_b"] = conv(p[f"{name}_w"], p[f"{name}_b"])
    packed["f1_w"], packed["f1_b"] = film(p["f1_mu_w"], p["f1_mu_b"],
                                          p["f1_sg_w"], p["f1_sg_b"])
    packed["f2_w"], packed["f2_b"] = film(p["f2_mu_w"], p["f2_mu_b"],
                                          p["f2_sg_w"], p["f2_sg_b"])
    return packed


# ----------------------------------------------------------------------------
# Forward pass
# ----------------------------------------------------------------------------

def upsample_forward(packed, x_nct, c_nct, *, factor=4, tile_t=None,
                     vmem_limit_bytes=None):
    """x_nct: [B, Cin, T], c_nct: [B, Ccond, T] -> [B, Cout, T*factor]."""
    B, Cin, T = x_nct.shape
    _, Ccond, _ = c_nct.shape
    Cout = packed["c5_b"].shape[1]
    f = factor

    dflt_tile, dflt_vmem = _device_defaults()
    if tile_t is None:
        tile_t = dflt_tile
    if vmem_limit_bytes is None:
        vmem_limit_bytes = dflt_vmem

    # NCT -> NTC so channels map to the 128-lane axis.  (MXU / store efficiency
    # assumes Cin/Cout/Ccond are multiples of 128 in production configs.)
    x = jnp.transpose(x_nct, (0, 2, 1))
    c = jnp.transpose(c_nct, (0, 2, 1))

    # --- static tiling math -------------------------------------------------
    t_up = T * f
    base = 8 * f                                     # keeps Tb%8==0 and Qb%8==0
    rf = 2 * sum(_DILATIONS)                         # total causal halo (=82)
    halo = _round_up(rf, (8 * f) // math.gcd(8, f))  # lcm(8, f) multiple >= rf
    assert halo >= rf, "circular pltpu.roll needs halo >= 2*sum(dilations)"
    tb = min(tile_t, _round_up(t_up, base))
    tb = _round_up(max(tb, halo + 2 * f), base)      # guarantees Qb >= Hq + 2
    n_tiles = -(-t_up // tb)
    t_up_pad = n_tiles * tb
    qb = tb // f
    hq = halo // f
    assert qb >= hq + 2, "interp-matrix column bound"
    w_rows = halo + tb
    src_len = (n_tiles + 1) * qb                     # so the "next" block exists

    # --- host-side prep (original resolution only, pre-cast to bf16) --------
    src = jnp.concatenate([_build_src(x, hq, src_len),
                           _build_src(c, hq, src_len)],
                          axis=-1).astype(MATMUL_DTYPE)      # [B, src_len, Cin+Ccond]
    m_np = _interp_matrix(w_rows, 2 * qb, f)
    m_cur = jnp.asarray(m_np[:, :qb], MATMUL_DTYPE)          # [W, Qb]
    m_nxt = jnp.asarray(m_np[:, qb:], MATMUL_DTYPE)          # [W, Qb]

    weight_args = [m_cur, m_nxt,
                   packed["c1_w"], packed["c1_b"],
                   packed["c2_w"], packed["c2_b"],
                   packed["f1_w"], packed["f1_b"],
                   packed["c3_w"], packed["c3_b"],
                   packed["c4_w"], packed["c4_b"],
                   packed["f2_w"], packed["f2_b"],
                   packed["c5_w"], packed["c5_b"]]

    ctot = Cin + Ccond

    def src_spec(off):
        return pl.BlockSpec((1, qb, ctot), lambda i, b, o=off: (b, i + o, 0))

    # Constant operands: whole-array VMEM residency -> fetched once, single
    # buffered (no double-buffer duplication of static weights).
    const_spec = pl.BlockSpec(memory_space=pltpu.MemorySpace.VMEM)
    in_specs = [src_spec(0), src_spec(1)] + [const_spec] * len(weight_args)

    kernel = functools.partial(_upsample_kernel, tile_t=tb, halo=halo, cin=Cin)

    out = pl.pallas_call(
        kernel,
        out_shape=jax.ShapeDtypeStruct((B, t_up_pad, Cout), x_nct.dtype),
        grid=(n_tiles, B),          # time tiles leading: axis worth splitting
                                    # across v7x's 2 TensorCores even if B == 1
        in_specs=in_specs,
        out_specs=pl.BlockSpec((1, tb, Cout), lambda i, b: (b, i, 0)),
        compiler_params=pltpu.CompilerParams(
            dimension_semantics=("parallel", "parallel"),
            vmem_limit_bytes=vmem_limit_bytes),
    )(src, src, *weight_args)

    if t_up_pad != t_up:
        out = out[:, :t_up, :]
    return jnp.transpose(out, (0, 2, 1))             # NTC -> NCT


# ----------------------------------------------------------------------------
# Demo / smoke test
# ----------------------------------------------------------------------------

if __name__ == "__main__":
    B, IN_CH, OUT_CH, COND_CH, T, FACTOR = 2, 8, 8, 4, 16, 4

    key = jax.random.PRNGKey(0)
    kx, kc, kp = jax.random.split(key, 3)
    x = jax.random.normal(kx, (B, IN_CH, T), jnp.float32)     # [B, Cin, T]
    c = jax.random.normal(kc, (B, COND_CH, T), jnp.float32)   # [B, Ccond, T]

    params = init_params(kp, IN_CH, OUT_CH, COND_CH)
    packed = pack_params(params)                  # pre-pack & pre-cast weights once

    fwd = jax.jit(functools.partial(upsample_forward, factor=FACTOR))
    out = jax.block_until_ready(fwd(packed, x, c))

    assert out.shape == (B, OUT_CH, T * FACTOR), out.shape
    assert bool(jnp.all(jnp.isfinite(out)))
    print("KERNEL_OK")
</pallas_src>

<mosaic_0001>
module attributes {stable_mosaic.version = 11 : i64} {
  func.func @_upsample_kernel(%arg0: i32, %arg1: i32, %arg2: memref<1x24x12xbf16, #tpu.memory_space<vmem>>, %arg3: memref<1x24x12xbf16, #tpu.memory_space<vmem>>, %arg4: memref<184x24xbf16, #tpu.memory_space<vmem>>, %arg5: memref<184x24xbf16, #tpu.memory_space<vmem>>, %arg6: memref<8x24xbf16, #tpu.memory_space<vmem>>, %arg7: memref<1x8xf32, #tpu.memory_space<vmem>>, %arg8: memref<8x24xbf16, #tpu.memory_space<vmem>>, %arg9: memref<1x8xf32, #tpu.memory_space<vmem>>, %arg10: memref<4x16xbf16, #tpu.memory_space<vmem>>, %arg11: memref<1x16xf32, #tpu.memory_space<vmem>>, %arg12: memref<8x24xbf16, #tpu.memory_space<vmem>>, %arg13: memref<1x8xf32, #tpu.memory_space<vmem>>, %arg14: memref<8x24xbf16, #tpu.memory_space<vmem>>, %arg15: memref<1x8xf32, #tpu.memory_space<vmem>>, %arg16: memref<4x16xbf16, #tpu.memory_space<vmem>>, %arg17: memref<1x16xf32, #tpu.memory_space<vmem>>, %arg18: memref<8x24xbf16, #tpu.memory_space<vmem>>, %arg19: memref<1x8xf32, #tpu.memory_space<vmem>>, %arg20: memref<1x96x8xf32, #tpu.memory_space<vmem>>) attributes {dimension_semantics = [#tpu.dimension_semantics<parallel>, #tpu.dimension_semantics<parallel>], iteration_bounds = array<i64: 1, 2>, scalar_prefetch = 0 : i64, scratch_operands = 0 : i64, tpu.core_type = #tpu.core_type<tc>, window_params = [{transform_indices = @transform_0, window_bounds = array<i64: 1, 24, 12>}, {transform_indices = @transform_1, window_bounds = array<i64: 1, 24, 12>}, {pipeline_mode = #tpu.pipeline_mode<synchronous>, transform_indices = @transform_2, window_bounds = array<i64: 184, 24>}, {pipeline_mode = #tpu.pipeline_mode<synchronous>, transform_indices = @transform_3, window_bounds = array<i64: 184, 24>}, {pipeline_mode = #tpu.pipeline_mode<synchronous>, transform_indices = @transform_4, window_bounds = array<i64: 8, 24>}, {pipeline_mode = #tpu.pipeline_mode<synchronous>, transform_indices = @transform_5, window_bounds = array<i64: 1, 8>}, {pipeline_mode = #tpu.pipeline_mode<synchronous>, transform_indices = @transform_6, window_bounds = array<i64: 8, 24>}, {pipeline_mode = #tpu.pipeline_mode<synchronous>, transform_indices = @transform_7, window_bounds = array<i64: 1, 8>}, {pipeline_mode = #tpu.pipeline_mode<synchronous>, transform_indices = @transform_8, window_bounds = array<i64: 4, 16>}, {pipeline_mode = #tpu.pipeline_mode<synchronous>, transform_indices = @transform_9, window_bounds = array<i64: 1, 16>}, {pipeline_mode = #tpu.pipeline_mode<synchronous>, transform_indices = @transform_10, window_bounds = array<i64: 8, 24>}, {pipeline_mode = #tpu.pipeline_mode<synchronous>, transform_indices = @transform_11, window_bounds = array<i64: 1, 8>}, {pipeline_mode = #tpu.pipeline_mode<synchronous>, transform_indices = @transform_12, window_bounds = array<i64: 8, 24>}, {pipeline_mode = #tpu.pipeline_mode<synchronous>, transform_indices = @transform_13, window_bounds = array<i64: 1, 8>}, {pipeline_mode = #tpu.pipeline_mode<synchronous>, transform_indices = @transform_14, window_bounds = array<i64: 4, 16>}, {pipeline_mode = #tpu.pipeline_mode<synchronous>, transform_indices = @transform_15, window_bounds = array<i64: 1, 16>}, {pipeline_mode = #tpu.pipeline_mode<synchronous>, transform_indices = @transform_16, window_bounds = array<i64: 8, 24>}, {pipeline_mode = #tpu.pipeline_mode<synchronous>, transform_indices = @transform_17, window_bounds = array<i64: 1, 8>}, {transform_indices = @transform_18, window_bounds = array<i64: 1, 96, 8>}]} {
    %c0 = arith.constant 0 : index
    %c0_0 = arith.constant 0 : index
    %0 = vector.load %arg4[%c0, %c0_0] : memref<184x24xbf16, #tpu.memory_space<vmem>>, vector<184x24xbf16>
    %c0_1 = arith.constant 0 : index
    %c0_2 = arith.constant 0 : index
    %c0_3 = arith.constant 0 : index
    %1 = vector.load %arg2[%c0_1, %c0_2, %c0_3] : memref<1x24x12xbf16, #tpu.memory_space<vmem>>, vector<1x24x12xbf16>
    %2 = vector.shape_cast %1 : vector<1x24x12xbf16> to vector<24x12xbf16>
    %cst = arith.constant dense<0.000000e+00> : vector<184x12xf32>
    %3 = tpu.matmul %0, %2, %cst {dimension_numbers = #tpu.dot_dimension_numbers<[1], [0], [0], [1], [0, 0, 1, 1], [], []>} : vector<184x24xbf16>, vector<24x12xbf16>, vector<184x12xf32> -> vector<184x12xf32>
    %c0_4 = arith.constant 0 : index
    %c0_5 = arith.constant 0 : index
    %4 = vector.load %arg5[%c0_4, %c0_5] : memref<184x24xbf16, #tpu.memory_space<vmem>>, vector<184x24xbf16>
    %c0_6 = arith.constant 0 : index
    %c0_7 = arith.constant 0 : index
    %c0_8 = arith.constant 0 : index
    %5 = vector.load %arg3[%c0_6, %c0_7, %c0_8] : memref<1x24x12xbf16, #tpu.memory_space<vmem>>, vector<1x24x12xbf16>
    %6 = vector.shape_cast %5 : vector<1x24x12xbf16> to vector<24x12xbf16>
    %cst_9 = arith.constant dense<0.000000e+00> : vector<184x12xf32>
    %7 = tpu.matmul %4, %6, %cst_9 {dimension_numbers = #tpu.dot_dimension_numbers<[1], [0], [0], [1], [0, 0, 1, 1], [], []>} : vector<184x24xbf16>, vector<24x12xbf16>, vector<184x12xf32> -> vector<184x12xf32>
    %8 = arith.addf %3, %7 : vector<184x12xf32>
    %9 = vector.extract_strided_slice %8 {offsets = [0, 0], sizes = [184, 8], strides = [1, 1]} : vector<184x12xf32> to vector<184x8xf32>
    %10 = vector.extract_strided_slice %8 {offsets = [0, 8], sizes = [184, 4], strides = [1, 1]} : vector<184x12xf32> to vector<184x4xf32>
    %11 = arith.truncf %10 : vector<184x4xf32> to vector<184x4xbf16>
    %12 = tpu.iota {dimensions = array<i32: 0>} : vector<184x1xi32>
    %c96_i32 = arith.constant 96 : i32
    %13 = arith.muli %arg0, %c96_i32 : i32
    %c88_i32 = arith.constant 88 : i32
    %14 = arith.subi %13, %c88_i32 : i32
    %15 = vector.broadcast %14 : i32 to vector<184x1xi32>
    %16 = arith.addi %12, %15 : vector<184x1xi32>
    %c0_i32 = arith.constant 0 : i32
    %17 = vector.broadcast %c0_i32 : i32 to vector<184x1xi32>
    %18 = arith.cmpi sge, %16, %17 : vector<184x1xi32>
    %cst_10 = arith.constant 0.000000e+00 : f32
    %19 = vector.broadcast %cst_10 : f32 to vector<184x8xf32>
    %20 = arith.cmpf oge, %9, %19 : vector<184x8xf32>
    %cst_11 = arith.constant 1.000000e-01 : f32
    %21 = vector.broadcast %cst_11 : f32 to vector<184x8xf32>
    %22 = arith.mulf %21, %9 : vector<184x8xf32>
    %23 = arith.select %20, %9, %22 : vector<184x8xi1>, vector<184x8xf32>
    %cst_12 = arith.constant 0.000000e+00 : f32
    %24 = vector.shape_cast %18 : vector<184x1xi1> to vector<184x1xi1>
    %25 = vector.broadcast %24 : vector<184x1xi1> to vector<184x8xi1>
    %26 = vector.broadcast %cst_12 : f32 to vector<184x8xf32>
    %27 = arith.select %25, %23, %26 : vector<184x8xi1>, vector<184x8xf32>
    %28 = arith.truncf %27 : vector<184x8xf32> to vector<184x8xbf16>
    %c0_13 = arith.constant 0 : index
    %c0_14 = arith.constant 0 : index
    %29 = vector.load %arg6[%c0_13, %c0_14] : memref<8x24xbf16, #tpu.memory_space<vmem>>, vector<8x24xbf16>
    %cst_15 = arith.constant dense<0.000000e+00> : vector<184x24xf32>
    %30 = tpu.matmul %28, %29, %cst_15 {dimension_numbers = #tpu.dot_dimension_numbers<[1], [0], [0], [1], [0, 0, 1, 1], [], []>} : vector<184x8xbf16>, vector<8x24xbf16>, vector<184x24xf32> -> vector<184x24xf32>
    %31 = vector.extract_strided_slice %30 {offsets = [0, 0], sizes = [184, 8], strides = [1, 1]} : vector<184x24xf32> to vector<184x8xf32>
    %c2_i32 = arith.constant 2 : i32
    %32 = tpu.dynamic_rotate %31 by %c2_i32 dim 0 : vector<184x8xf32>, i32 -> vector<184x8xf32>
    %33 = vector.extract_strided_slice %30 {offsets = [0, 8], sizes = [184, 8], strides = [1, 1]} : vector<184x24xf32> to vector<184x8xf32>
    %c1_i32 = arith.constant 1 : i32
    %34 = tpu.dynamic_rotate %33 by %c1_i32 dim 0 : vector<184x8xf32>, i32 -> vector<184x8xf32>
    %35 = arith.addf %32, %34 : vector<184x8xf32>
    %36 = vector.extract_strided_slice %30 {offsets = [0, 16], sizes = [184, 8], strides = [1, 1]} : vector<184x24xf32> to vector<184x8xf32>
    %37 = arith.addf %35, %36 : vector<184x8xf32>
    %c0_16 = arith.constant 0 : index
    %c0_17 = arith.constant 0 : index
    %38 = vector.load %arg7[%c0_16, %c0_17] : memref<1x8xf32, #tpu.memory_space<vmem>>, vector<1x8xf32>
    %39 = vector.broadcast %38 : vector<1x8xf32> to vector<184x8xf32>
    %40 = arith.addf %37, %39 : vector<184x8xf32>
    %cst_18 = arith.constant 0.000000e+00 : f32
    %41 = vector.broadcast %cst_18 : f32 to vector<184x8xf32>
    %42 = arith.cmpf oge, %40, %41 : vector<184x8xf32>
    %cst_19 = arith.constant 1.000000e-01 : f32
    %43 = vector.broadcast %cst_19 : f32 to vector<184x8xf32>
    %44 = arith.mulf %43, %40 : vector<184x8xf32>
    %45 = arith.select %42, %40, %44 : vector<184x8xi1>, vector<184x8xf32>
    %cst_20 = arith.constant 0.000000e+00 : f32
    %46 = vector.shape_cast %18 : vector<184x1xi1> to vector<184x1xi1>
    %47 = vector.broadcast %46 : vector<184x1xi1> to vector<184x8xi1>
    %48 = vector.broadcast %cst_20 : f32 to vector<184x8xf32>
    %49 = arith.select %47, %45, %48 : vector<184x8xi1>, vector<184x8xf32>
    %50 = arith.truncf %49 : vector<184x8xf32> to vector<184x8xbf16>
    %c0_21 = arith.constant 0 : index
    %c0_22 = arith.constant 0 : index
    %51 = vector.load %arg8[%c0_21, %c0_22] : memref<8x24xbf16, #tpu.memory_space<vmem>>, vector<8x24xbf16>
    %cst_23 = arith.constant dense<0.000000e+00> : vector<184x24xf32>
    %52 = tpu.matmul %50, %51, %cst_23 {dimension_numbers = #tpu.dot_dimension_numbers<[1], [0], [0], [1], [0, 0, 1, 1], [], []>} : vector<184x8xbf16>, vector<8x24xbf16>, vector<184x24xf32> -> vector<184x24xf32>
    %53 = vector.extract_strided_slice %52 {offsets = [0, 0], sizes = [184, 8], strides = [1, 1]} : vector<184x24xf32> to vector<184x8xf32>
    %c6_i32 = arith.constant 6 : i32
    %54 = tpu.dynamic_rotate %53 by %c6_i32 dim 0 : vector<184x8xf32>, i32 -> vector<184x8xf32>
    %55 = vector.extract_strided_slice %52 {offsets = [0, 8], sizes = [184, 8], strides = [1, 1]} : vector<184x24xf32> to vector<184x8xf32>
    %c3_i32 = arith.constant 3 : i32
    %56 = tpu.dynamic_rotate %55 by %c3_i32 dim 0 : vector<184x8xf32>, i32 -> vector<184x8xf32>
    %57 = arith.addf %54, %56 : vector<184x8xf32>
    %58 = vector.extract_strided_slice %52 {offsets = [0, 16], sizes = [184, 8], strides = [1, 1]} : vector<184x24xf32> to vector<184x8xf32>
    %59 = arith.addf %57, %58 : vector<184x8xf32>
    %c0_24 = arith.constant 0 : index
    %c0_25 = arith.constant 0 : index
    %60 = vector.load %arg9[%c0_24, %c0_25] : memref<1x8xf32, #tpu.memory_space<vmem>>, vector<1x8xf32>
    %61 = vector.broadcast %60 : vector<1x8xf32> to vector<184x8xf32>
    %62 = arith.addf %59, %61 : vector<184x8xf32>
    %c0_26 = arith.constant 0 : index
    %c0_27 = arith.constant 0 : index
    %63 = vector.load %arg10[%c0_26, %c0_27] : memref<4x16xbf16, #tpu.memory_space<vmem>>, vector<4x16xbf16>
    %cst_28 = arith.constant dense<0.000000e+00> : vector<184x16xf32>
    %64 = tpu.matmul %11, %63, %cst_28 {dimension_numbers = #tpu.dot_dimension_numbers<[1], [0], [0], [1], [0, 0, 1, 1], [], []>} : vector<184x4xbf16>, vector<4x16xbf16>, vector<184x16xf32> -> vector<184x16xf32>
    %c0_29 = arith.constant 0 : index
    %c0_30 = arith.constant 0 : index
    %65 = vector.load %arg11[%c0_29, %c0_30] : memref<1x16xf32, #tpu.memory_space<vmem>>, vector<1x16xf32>
    %66 = vector.broadcast %65 : vector<1x16xf32> to vector<184x16xf32>
    %67 = arith.addf %64, %66 : vector<184x16xf32>
    %68 = vector.extract_strided_slice %67 {offsets = [0, 0], sizes = [184, 8], strides = [1, 1]} : vector<184x16xf32> to vector<184x8xf32>
    %69 = arith.mulf %62, %68 : vector<184x8xf32>
    %70 = vector.extract_strided_slice %67 {offsets = [0, 8], sizes = [184, 8], strides = [1, 1]} : vector<184x16xf32> to vector<184x8xf32>
    %71 = arith.addf %69, %70 : vector<184x8xf32>
    %72 = arith.addf %71, %9 : vector<184x8xf32>
    %cst_31 = arith.constant 0.000000e+00 : f32
    %73 = vector.broadcast %cst_31 : f32 to vector<184x8xf32>
    %74 = arith.cmpf oge, %72, %73 : vector<184x8xf32>
    %cst_32 = arith.constant 1.000000e-01 : f32
    %75 = vector.broadcast %cst_32 : f32 to vector<184x8xf32>
    %76 = arith.mulf %75, %72 : vector<184x8xf32>
    %77 = arith.select %74, %72, %76 : vector<184x8xi1>, vector<184x8xf32>
    %cst_33 = arith.constant 0.000000e+00 : f32
    %78 = vector.shape_cast %18 : vector<184x1xi1> to vector<184x1xi1>
    %79 = vector.broadcast %78 : vector<184x1xi1> to vector<184x8xi1>
    %80 = vector.broadcast %cst_33 : f32 to vector<184x8xf32>
    %81 = arith.select %79, %77, %80 : vector<184x8xi1>, vector<184x8xf32>
    %82 = arith.truncf %81 : vector<184x8xf32> to vector<184x8xbf16>
    %c0_34 = arith.constant 0 : index
    %c0_35 = arith.constant 0 : index
    %83 = vector.load %arg12[%c0_34, %c0_35] : memref<8x24xbf16, #tpu.memory_space<vmem>>, vector<8x24xbf16>
    %cst_36 = arith.constant dense<0.000000e+00> : vector<184x24xf32>
    %84 = tpu.matmul %82, %83, %cst_36 {dimension_numbers = #tpu.dot_dimension_numbers<[1], [0], [0], [1], [0, 0, 1, 1], [], []>} : vector<184x8xbf16>, vector<8x24xbf16>, vector<184x24xf32> -> vector<184x24xf32>
    %85 = vector.extract_strided_slice %84 {offsets = [0, 0], sizes = [184, 8], strides = [1, 1]} : vector<184x24xf32> to vector<184x8xf32>
    %c18_i32 = arith.constant 18 : i32
    %86 = tpu.dynamic_rotate %85 by %c18_i32 dim 0 : vector<184x8xf32>, i32 -> vector<184x8xf32>
    %87 = vector.extract_strided_slice %84 {offsets = [0, 8], sizes = [184, 8], strides = [1, 1]} : vector<184x24xf32> to vector<184x8xf32>
    %c9_i32 = arith.constant 9 : i32
    %88 = tpu.dynamic_rotate %87 by %c9_i32 dim 0 : vector<184x8xf32>, i32 -> vector<184x8xf32>
    %89 = arith.addf %86, %88 : vector<184x8xf32>
    %90 = vector.extract_strided_slice %84 {offsets = [0, 16], sizes = [184, 8], strides = [1, 1]} : vector<184x24xf32> to vector<184x8xf32>
    %91 = arith.addf %89, %90 : vector<184x8xf32>
    %c0_37 = arith.constant 0 : index
    %c0_38 = arith.constant 0 : index
    %92 = vector.load %arg13[%c0_37, %c0_38] : memref<1x8xf32, #tpu.memory_space<vmem>>, vector<1x8xf32>
    %93 = vector.broadcast %92 : vector<1x8xf32> to vector<184x8xf32>
    %94 = arith.addf %91, %93 : vector<184x8xf32>
    %cst_39 = arith.constant 0.000000e+00 : f32
    %95 = vector.broadcast %cst_39 : f32 to vector<184x8xf32>
    %96 = arith.cmpf oge, %94, %95 : vector<184x8xf32>
    %cst_40 = arith.constant 1.000000e-01 : f32
    %97 = vector.broadcast %cst_40 : f32 to vector<184x8xf32>
    %98 = arith.mulf %97, %94 : vector<184x8xf32>
    %99 = arith.select %96, %94, %98 : vector<184x8xi1>, vector<184x8xf32>
    %cst_41 = arith.constant 0.000000e+00 : f32
    %100 = vector.shape_cast %18 : vector<184x1xi1> to vector<184x1xi1>
    %101 = vector.broadcast %100 : vector<184x1xi1> to vector<184x8xi1>
    %102 = vector.broadcast %cst_41 : f32 to vector<184x8xf32>
    %103 = arith.select %101, %99, %102 : vector<184x8xi1>, vector<184x8xf32>
    %104 = arith.truncf %103 : vector<184x8xf32> to vector<184x8xbf16>
    %c0_42 = arith.constant 0 : index
    %c0_43 = arith.constant 0 : index
    %105 = vector.load %arg14[%c0_42, %c0_43] : memref<8x24xbf16, #tpu.memory_space<vmem>>, vector<8x24xbf16>
    %cst_44 = arith.constant dense<0.000000e+00> : vector<184x24xf32>
    %106 = tpu.matmul %104, %105, %cst_44 {dimension_numbers = #tpu.dot_dimension_numbers<[1], [0], [0], [1], [0, 0, 1, 1], [], []>} : vector<184x8xbf16>, vector<8x24xbf16>, vector<184x24xf32> -> vector<184x24xf32>
    %107 = vector.extract_strided_slice %106 {offsets = [0, 0], sizes = [184, 8], strides = [1, 1]} : vector<184x24xf32> to vector<184x8xf32>
    %c54_i32 = arith.constant 54 : i32
    %108 = tpu.dynamic_rotate %107 by %c54_i32 dim 0 : vector<184x8xf32>, i32 -> vector<184x8xf32>
    %109 = vector.extract_strided_slice %106 {offsets = [0, 8], sizes = [184, 8], strides = [1, 1]} : vector<184x24xf32> to vector<184x8xf32>
    %c27_i32 = arith.constant 27 : i32
    %110 = tpu.dynamic_rotate %109 by %c27_i32 dim 0 : vector<184x8xf32>, i32 -> vector<184x8xf32>
    %111 = arith.addf %108, %110 : vector<184x8xf32>
    %112 = vector.extract_strided_slice %106 {offsets = [0, 16], sizes = [184, 8], strides = [1, 1]} : vector<184x24xf32> to vector<184x8xf32>
    %113 = arith.addf %111, %112 : vector<184x8xf32>
    %c0_45 = arith.constant 0 : index
    %c0_46 = arith.constant 0 : index
    %114 = vector.load %arg15[%c0_45, %c0_46] : memref<1x8xf32, #tpu.memory_space<vmem>>, vector<1x8xf32>
    %115 = vector.broadcast %114 : vector<1x8xf32> to vector<184x8xf32>
    %116 = arith.addf %113, %115 : vector<184x8xf32>
    %c0_47 = arith.constant 0 : index
    %c0_48 = arith.constant 0 : index
    %117 = vector.load %arg16[%c0_47, %c0_48] : memref<4x16xbf16, #tpu.memory_space<vmem>>, vector<4x16xbf16>
    %cst_49 = arith.constant dense<0.000000e+00> : vector<184x16xf32>
    %118 = tpu.matmul %11, %117, %cst_49 {dimension_numbers = #tpu.dot_dimension_numbers<[1], [0], [0], [1], [0, 0, 1, 1], [], []>} : vector<184x4xbf16>, vector<4x16xbf16>, vector<184x16xf32> -> vector<184x16xf32>
    %c0_50 = arith.constant 0 : index
    %c0_51 = arith.constant 0 : index
    %119 = vector.load %arg17[%c0_50, %c0_51] : memref<1x16xf32, #tpu.memory_space<vmem>>, vector<1x16xf32>
    %120 = vector.broadcast %119 : vector<1x16xf32> to vector<184x16xf32>
    %121 = arith.addf %118, %120 : vector<184x16xf32>
    %122 = vector.extract_strided_slice %121 {offsets = [0, 0], sizes = [184, 8], strides = [1, 1]} : vector<184x16xf32> to vector<184x8xf32>
    %123 = arith.mulf %116, %122 : vector<184x8xf32>
    %124 = vector.extract_strided_slice %121 {offsets = [0, 8], sizes = [184, 8], strides = [1, 1]} : vector<184x16xf32> to vector<184x8xf32>
    %125 = arith.addf %123, %124 : vector<184x8xf32>
    %126 = arith.addf %125, %72 : vector<184x8xf32>
    %cst_52 = arith.constant 0.000000e+00 : f32
    %127 = vector.shape_cast %18 : vector<184x1xi1> to vector<184x1xi1>
    %128 = vector.broadcast %127 : vector<184x1xi1> to vector<184x8xi1>
    %129 = vector.broadcast %cst_52 : f32 to vector<184x8xf32>
    %130 = arith.select %128, %126, %129 : vector<184x8xi1>, vector<184x8xf32>
    %131 = arith.truncf %130 : vector<184x8xf32> to vector<184x8xbf16>
    %c0_53 = arith.constant 0 : index
    %c0_54 = arith.constant 0 : index
    %132 = vector.load %arg18[%c0_53, %c0_54] : memref<8x24xbf16, #tpu.memory_space<vmem>>, vector<8x24xbf16>
    %cst_55 = arith.constant dense<0.000000e+00> : vector<184x24xf32>
    %133 = tpu.matmul %131, %132, %cst_55 {dimension_numbers = #tpu.dot_dimension_numbers<[1], [0], [0], [1], [0, 0, 1, 1], [], []>} : vector<184x8xbf16>, vector<8x24xbf16>, vector<184x24xf32> -> vector<184x24xf32>
    %134 = vector.extract_strided_slice %133 {offsets = [0, 0], sizes = [184, 8], strides = [1, 1]} : vector<184x24xf32> to vector<184x8xf32>
    %c2_i32_56 = arith.constant 2 : i32
    %135 = tpu.dynamic_rotate %134 by %c2_i32_56 dim 0 : vector<184x8xf32>, i32 -> vector<184x8xf32>
    %136 = vector.extract_strided_slice %133 {offsets = [0, 8], sizes = [184, 8], strides = [1, 1]} : vector<184x24xf32> to vector<184x8xf32>
    %c1_i32_57 = arith.constant 1 : i32
    %137 = tpu.dynamic_rotate %136 by %c1_i32_57 dim 0 : vector<184x8xf32>, i32 -> vector<184x8xf32>
    %138 = arith.addf %135, %137 : vector<184x8xf32>
    %139 = vector.extract_strided_slice %133 {offsets = [0, 16], sizes = [184, 8], strides = [1, 1]} : vector<184x24xf32> to vector<184x8xf32>
    %140 = arith.addf %138, %139 : vector<184x8xf32>
    %c0_58 = arith.constant 0 : index
    %c0_59 = arith.constant 0 : index
    %141 = vector.load %arg19[%c0_58, %c0_59] : memref<1x8xf32, #tpu.memory_space<vmem>>, vector<1x8xf32>
    %142 = vector.broadcast %141 : vector<1x8xf32> to vector<184x8xf32>
    %143 = arith.addf %140, %142 : vector<184x8xf32>
    %144 = vector.extract_strided_slice %143 {offsets = [88, 0], sizes = [96, 8], strides = [1, 1]} : vector<184x8xf32> to vector<96x8xf32>
    %c0_60 = arith.constant 0 : index
    %c0_61 = arith.constant 0 : index
    %c0_62 = arith.constant 0 : index
    %145 = vector.load %arg20[%c0_60, %c0_61, %c0_62] : memref<1x96x8xf32, #tpu.memory_space<vmem>>, vector<1x96x8xf32>
    %146 = vector.shape_cast %145 : vector<1x96x8xf32> to vector<96x8xf32>
    %147 = vector.shape_cast %144 : vector<96x8xf32> to vector<1x96x8xf32>
    tpu.vector_store %arg20[%c0_60, %c0_61, %c0_62], %147 {strides = array<i32>} : memref<1x96x8xf32, #tpu.memory_space<vmem>>, vector<1x96x8xf32>,
    return
  }
  func.func @transform_0(%arg0: i32, %arg1: i32) -> (i32, i32, i32) {
    %c0_i32 = arith.constant 0 : i32
    %0 = arith.addi %arg0, %c0_i32 : i32
    %c0_i32_0 = arith.constant 0 : i32
    %c0_i32_1 = arith.constant 0 : i32
    return %arg1, %0, %c0_i32_0 : i32, i32, i32
  }
  func.func @transform_1(%arg0: i32, %arg1: i32) -> (i32, i32, i32) {
    %c1_i32 = arith.constant 1 : i32
    %0 = arith.addi %arg0, %c1_i32 : i32
    %c0_i32 = arith.constant 0 : i32
    %c0_i32_0 = arith.constant 0 : i32
    return %arg1, %0, %c0_i32 : i32, i32, i32
  }
  func.func @transform_2(%arg0: i32, %arg1: i32) -> (i32, i32) {
    %c0_i32 = arith.constant 0 : i32
    %c0_i32_0 = arith.constant 0 : i32
    %c0_i32_1 = arith.constant 0 : i32
    return %c0_i32, %c0_i32_0 : i32, i32
  }
  func.func @transform_3(%arg0: i32, %arg1: i32) -> (i32, i32) {
    %c0_i32 = arith.constant 0 : i32
    %c0_i32_0 = arith.constant 0 : i32
    %c0_i32_1 = arith.constant 0 : i32
    return %c0_i32, %c0_i32_0 : i32, i32
  }
  func.func @transform_4(%arg0: i32, %arg1: i32) -> (i32, i32) {
    %c0_i32 = arith.constant 0 : i32
    %c0_i32_0 = arith.constant 0 : i32
    %c0_i32_1 = arith.constant 0 : i32
    return %c0_i32, %c0_i32_0 : i32, i32
  }
  func.func @transform_5(%arg0: i32, %arg1: i32) -> (i32, i32) {
    %c0_i32 = arith.constant 0 : i32
    %c0_i32_0 = arith.constant 0 : i32
    %c0_i32_1 = arith.constant 0 : i32
    return %c0_i32, %c0_i32_0 : i32, i32
  }
  func.func @transform_6(%arg0: i32, %arg1: i32) -> (i32, i32) {
    %c0_i32 = arith.constant 0 : i32
    %c0_i32_0 = arith.constant 0 : i32
    %c0_i32_1 = arith.constant 0 : i32
    return %c0_i32, %c0_i32_0 : i32, i32
  }
  func.func @transform_7(%arg0: i32, %arg1: i32) -> (i32, i32) {
    %c0_i32 = arith.constant 0 : i32
    %c0_i32_0 = arith.constant 0 : i32
    %c0_i32_1 = arith.constant 0 : i32
    return %c0_i32, %c0_i32_0 : i32, i32
  }
  func.func @transform_8(%arg0: i32, %arg1: i32) -> (i32, i32) {
    %c0_i32 = arith.constant 0 : i32
    %c0_i32_0 = arith.constant 0 : i32
    %c0_i32_1 = arith.constant 0 : i32
    return %c0_i32, %c0_i32_0 : i32, i32
  }
  func.func @transform_9(%arg0: i32, %arg1: i32) -> (i32, i32) {
    %c0_i32 = arith.constant 0 : i32
    %c0_i32_0 = arith.constant 0 : i32
    %c0_i32_1 = arith.constant 0 : i32
    return %c0_i32, %c0_i32_0 : i32, i32
  }
  func.func @transform_10(%arg0: i32, %arg1: i32) -> (i32, i32) {
    %c0_i32 = arith.constant 0 : i32
    %c0_i32_0 = arith.constant 0 : i32
    %c0_i32_1 = arith.constant 0 : i32
    return %c0_i32, %c0_i32_0 : i32, i32
  }
  func.func @transform_11(%arg0: i32, %arg1: i32) -> (i32, i32) {
    %c0_i32 = arith.constant 0 : i32
    %c0_i32_0 = arith.constant 0 : i32
    %c0_i32_1 = arith.constant 0 : i32
    return %c0_i32, %c0_i32_0 : i32, i32
  }
  func.func @transform_12(%arg0: i32, %arg1: i32) -> (i32, i32) {
    %c0_i32 = arith.constant 0 : i32
    %c0_i32_0 = arith.constant 0 : i32
    %c0_i32_1 = arith.constant 0 : i32
    return %c0_i32, %c0_i32_0 : i32, i32
  }
  func.func @transform_13(%arg0: i32, %arg1: i32) -> (i32, i32) {
    %c0_i32 = arith.constant 0 : i32
    %c0_i32_0 = arith.constant 0 : i32
    %c0_i32_1 = arith.constant 0 : i32
    return %c0_i32, %c0_i32_0 : i32, i32
  }
  func.func @transform_14(%arg0: i32, %arg1: i32) -> (i32, i32) {
    %c0_i32 = arith.constant 0 : i32
    %c0_i32_0 = arith.constant 0 : i32
    %c0_i32_1 = arith.constant 0 : i32
    return %c0_i32, %c0_i32_0 : i32, i32
  }
  func.func @transform_15(%arg0: i32, %arg1: i32) -> (i32, i32) {
    %c0_i32 = arith.constant 0 : i32
    %c0_i32_0 = arith.constant 0 : i32
    %c0_i32_1 = arith.constant 0 : i32
    return %c0_i32, %c0_i32_0 : i32, i32
  }
  func.func @transform_16(%arg0: i32, %arg1: i32) -> (i32, i32) {
    %c0_i32 = arith.constant 0 : i32
    %c0_i32_0 = arith.constant 0 : i32
    %c0_i32_1 = arith.constant 0 : i32
    return %c0_i32, %c0_i32_0 : i32, i32
  }
  func.func @transform_17(%arg0: i32, %arg1: i32) -> (i32, i32) {
    %c0_i32 = arith.constant 0 : i32
    %c0_i32_0 = arith.constant 0 : i32
    %c0_i32_1 = arith.constant 0 : i32
    return %c0_i32, %c0_i32_0 : i32, i32
  }
  func.func @transform_18(%arg0: i32, %arg1: i32) -> (i32, i32, i32) {
    %c0_i32 = arith.constant 0 : i32
    %c0_i32_0 = arith.constant 0 : i32
    return %arg1, %arg0, %c0_i32 : i32, i32, i32
  }
}

</mosaic_0001>

<bundles_post_ra>
// kernel: upsample_forward.1
= control target key start
LH: loop header
LB: loop body
LE: loop exit
PB: predicated region body
PF: predicated region fallthrough
CT: control target
= control target key end

     0   :  { %s4706_s27 = smov 0   ;;  %s4708_s28 = smov 0   ;;  %s6068_s0 = inlined_call_operand.vmem [shape: bf16[2,48,12], index: 0, kind: input, shape index: {}, may-alias: {0,1}]   ;;  %s6069_s1 = inlined_call_operand.vmem [shape: bf16[2,48,12], index: 1, kind: input, shape index: {}, may-alias: {0,1}]   ;;  %s6070_s2 = inlined_call_operand.vmem [shape: bf16[184,24], index: 2, kind: input, shape index: {}]   ;;  %s6071_s3 = inlined_call_operand.vmem [shape: bf16[184,24], index: 3, kind: input, shape index: {}]   ;;  %s6072_s4 = inlined_call_operand.vmem [shape: bf16[8,24], index: 4, kind: input, shape index: {}]   ;;  %s6073_s5 = inlined_call_operand.vmem [shape: f32[1,8], index: 5, kind: input, shape index: {}]   ;;  %s6074_s6 = inlined_call_operand.vmem [shape: bf16[8,24], index: 6, kind: input, shape index: {}]   ;;  %s6075_s7 = inlined_call_operand.vmem [shape: f32[1,8], index: 7, kind: input, shape index: {}]   ;;  %s6076_s8 = inlined_call_operand.vmem [shape: bf16[4,16], index: 8, kind: input, shape index: {}]   ;;  %s6077_s9 = inlined_call_operand.vmem [shape: f32[1,16], index: 9, kind: input, shape index: {}]   ;;  %s6078_s10 = inlined_call_operand.vmem [shape: bf16[8,24], index: 10, kind: input, shape index: {}]   ;;  %s6079_s11 = inlined_call_operand.vmem [shape: f32[1,8], index: 11, kind: input, shape index: {}]   ;;  %s6080_s12 = inlined_call_operand.vmem [shape: bf16[8,24], index: 12, kind: input, shape index: {}]   ;;  %s6081_s13 = inlined_call_operand.vmem [shape: f32[1,8], index: 13, kind: input, shape index: {}]   ;;  %s6082_s14 = inlined_call_operand.vmem [shape: bf16[4,16], index: 14, kind: input, shape index: {}]   ;;  %s6083_s15 = inlined_call_operand.vmem [shape: f32[1,16], index: 15, kind: input, shape index: {}]   ;;  %s6084_s16 = inlined_call_operand.vmem [shape: bf16[8,24], index: 16, kind: input, shape index: {}]   ;;  %s6085_s17 = inlined_call_operand.vmem [shape: f32[1,8], index: 17, kind: input, shape index: {}]   ;;  %s6086_s18 = inlined_call_operand.vmem [shape: f32[2,96,8], index: 18, kind: output, shape index: {}]  }
   0x1   :  { %6092 = sst [smem:[#allocation9_spill]] %s6068_s0  ;;  %s4710_s29 = smov 0  }
   0x2   :  { %6093 = sst [smem:[#allocation10_spill]] %s6069_s1 }
   0x3   :  { %6094 = sst [smem:[#allocation11_spill]] %s6070_s2 }
   0x4 LB: > { %s37_s30 = sadd.s32 1, %s4601_s28  ;;  %p4329_p0 = scmp.ge.s32.totalorder %s4605_s29, 1  ;;  %s4605_s29 = sphi %s4710_s29, %s28_s29   ;;  %s4601_s28 = sphi %s4708_s28, %s6115_s28   ;;  %s4597_s27 = sphi %s4706_s27, %s6114_s27  }
   0x5   : > { %p38_p1 = scmp.ge.s32.totalorder %s37_s30, 2  ;;  %p554_p2 = scmp.lt.s32.totalorder %s4605_s29, 3 }
   0x7   : > { %s6117_s30 = smov (%p38_p1, %s37_s30), 0  ;;  %p555_p3 = pnand %p4329_p0, %p554_p2 }
   0x8   : > { %6095 = sst [smem:[#allocation2_spill]] %s6117_s30 }
   0x9   : > { %558 = sbr.rel (%p555_p3) target bundleno = 1698 (0x6a2), region = 92 }
   0xe   : > { %p627_p4 = scmp.lt.s32.totalorder %s4597_s27, 1  ;;  %s6096_s21 = sld [smem:[#allocation10_spill]]  ;;  %vm815_vm0 = vcmask 1043456   ;;  %v707_v4 = vld [vmem:[%s6071_s3 + $0x58] sm:$0xf]  ;;  %v4528_v12 = vld [vmem:[%s6071_s3] sm:$0xff] }
   0xf   : > { %s6097_s24 = sld [smem:[#allocation9_spill]]  ;;  %v756_v8 = vunpack.c.l.b16 %v707_v4  ;;  %vm778_vm1 = vcmask 195584   ;;  %v4529_v15 = vld [vmem:[%s6071_s3 + $0x8] sm:$0xff]  ;;  %v4530_v17 = vld [vmem:[%s6071_s3 + $0x10] sm:$0xff]  ;;  %v4531_v19 = vld [vmem:[%s6071_s3 + $0x18] sm:$0xff]  ;;  %v6088_v60 = vmov 0.0|0.0  }
  0x10   : > { %s6119_s27 = smov (!%p627_p4, %s4597_s27), 1  ;;  %s6098_s20 = sld [smem:[#allocation11_spill]]  ;;  %v4532_v21 = vld [vmem:[%s6071_s3 + $0x20] sm:$0xff]  ;;  %v4533_v23 = vld [vmem:[%s6071_s3 + $0x28] sm:$0xff]  ;;  %v4534_v25 = vld [vmem:[%s6071_s3 + $0x30] sm:$0xff]  ;;  %vm2351_vm2 = vcmask 1041408  }
  0x11   : > { %s4544_s0 = smul.u32 24, %s6119_s27  ;;  %v768_v11 = vpack.c.b16 %v756_v8, %v756_v8  ;;  %v4535_v27 = vld [vmem:[%s6071_s3 + $0x38] sm:$0xff]  ;;  %v4536_v29 = vld [vmem:[%s6071_s3 + $0x40] sm:$0xff]  ;;  %v4537_v35 = vld [vmem:[%s6071_s3 + $0x48] sm:$0xff]  ;;  %vm1297_vm4 = vcmask 64512   ;;  %vm2314_vm9 = vcmask 31744  }
  0x12   : > { %v4538_v44 = vld [vmem:[%s6071_s3 + $0x50] sm:$0xff]  ;;  %v1296_v55 = vld [vmem:[%s6072_s4] sm:$0xf]  ;;  %s4546_s30 = smul.u32 96, %s6119_s27 }
  0x13   : > { %s4515_s19 = sadd.s32 12, %s4544_s0  ;;  %v1335_v56 = vsel %vm815_vm0, %v1296_v55, 0 }
  0x14   : > { %s645_s22 = scalar_lea.vmem %s6096_s21, %s4515_s19  ;;  %4542 = vmatpush.bf16.msra.mxu2 %v1335_v56  ;;  %4543 = vmatpush.bf16.msra.mxu3 %v1335_v56  ;;  %s4610_s19 = smov 112  }
  0x15   : > { %s634_s25 = scalar_lea.vmem %s6097_s24, %s4544_s0  ;;  %v710_v0 = vld [vmem:[%s645_s22 + $0x8] sm:$0xf]  ;;  %v4539_v9 = vld [vmem:[%s645_s22] sm:$0xff]  ;;  %s4607_s22 = smov 120  }
  0x16   : > { %v684_v1 = vld [vmem:[%s634_s25 + $0x8] sm:$0xf]  ;;  %v774_v2 = vunpack.c.l.b16 %v710_v0  ;;  %v4527_v13 = vld [vmem:[%s634_s25] sm:$0xff]  ;;  %v4518_v18 = vld [vmem:[%s6098_s20 + $0x10] sm:$0xff]  ;;  %s5981_s24 = scalar_lea.vmem %s6086_s18, %s4546_s30 }
  0x17   : > { %v950_v3 = vunpack.c.l.b16 %v684_v1  ;;  %v4516_v14 = vld [vmem:[%s6098_s20] sm:$0xff]  ;;  %v4517_v16 = vld [vmem:[%s6098_s20 + $0x8] sm:$0xff]  ;;  %v4519_v20 = vld [vmem:[%s6098_s20 + $0x18] sm:$0xff]  ;;  %1365 = vmatmul.bf16.vlgmr.msra.gmra.mxu2 %v6088_v60 }
  0x18   : > { %v776_v5 = vpack.c.b16 %v774_v2, %v774_v2  ;;  %v4520_v22 = vld [vmem:[%s6098_s20 + $0x20] sm:$0xff]  ;;  %v4521_v24 = vld [vmem:[%s6098_s20 + $0x28] sm:$0xff]  ;;  %v4522_v26 = vld [vmem:[%s6098_s20 + $0x30] sm:$0xff] }
  0x19   : > { %v952_v6 = vpack.c.b16 %v950_v3, %v950_v3  ;;  %v4523_v28 = vld [vmem:[%s6098_s20 + $0x38] sm:$0xff]  ;;  %v4524_v34 = vld [vmem:[%s6098_s20 + $0x40] sm:$0xff]  ;;  %v4525_v43 = vld [vmem:[%s6098_s20 + $0x48] sm:$0xff] }
  0x1a   : > { %v817_v7 = vsel %vm815_vm0, %v776_v5, 0  ;;  %v4526_v52 = vld [vmem:[%s6098_s20 + $0x50] sm:$0xff]  ;;  %v681_v59 = vld [vmem:[%s6098_s20 + $0x58] sm:$0xf] }
  0x1b   : > { %4540 = vmatpush.bf16.msra.mxu1 %v817_v7  ;;  %825 = vmatpush.bf16.msra.mxu0 %v817_v7  ;;  %v991_v10 = vsel %vm815_vm0, %v952_v6, 0  ;;  %v932_v0 = vunpack.c.l.b16 %v681_v59 }
  0x1d   : > { %v944_v1 = vpack.c.b16 %v932_v0, %v932_v0 }
  0x1f   : > { %4541 = vmatpush.bf16.msra.mxu1 %v4539_v9  ;;  %826 = vmatpush.bf16.msra.mxu0 %v4539_v9 }
  0x22   : > { %4392 = vmatmul.msk.bf16.vlgmr.msra.gmra.mxu1 %vm778_vm1, %v768_v11  ;;  %4381 = vmatmul.msk.bf16.vlgmr.msra.gmra.mxu0 %vm778_vm1, %v4528_v12 }
  0x23   : > { %999 = vmatpush.bf16.msrb.mxu1 %v991_v10  ;;  %1344 = vmatpush.bf16.msrb.mxu0 %v1335_v56 }
  0x27   : > { %1000 = vmatpush.bf16.msrb.mxu1 %v4527_v13 }
  0x32   : > { %4441 = vmatmul.msk.bf16.vlgmr.msrb.gmra.mxu1 %vm778_vm1, %v4516_v14  ;;  %4382 = vmatmul.msk.bf16.gmra.mxu0 %vm778_vm1, %v4529_v15 }
  0x42   : > { %4442 = vmatmul.msk.bf16.gmra.mxu1 %vm778_vm1, %v4517_v16  ;;  %4383 = vmatmul.msk.bf16.gmra.mxu0 %vm778_vm1, %v4530_v17 }
  0x52   : > { %4443 = vmatmul.msk.bf16.gmra.mxu1 %vm778_vm1, %v4518_v18  ;;  %4384 = vmatmul.msk.bf16.gmra.mxu0 %vm778_vm1, %v4531_v19 }
  0x62   : > { %4444 = vmatmul.msk.bf16.gmra.mxu1 %vm778_vm1, %v4519_v20  ;;  %4385 = vmatmul.msk.bf16.gmra.mxu0 %vm778_vm1, %v4532_v21 }
  0x72   : > { %4445 = vmatmul.msk.bf16.gmra.mxu1 %vm778_vm1, %v4520_v22  ;;  %4386 = vmatmul.msk.bf16.gmra.mxu0 %vm778_vm1, %v4533_v23  ;;  %v3660_v22 = vld [vmem:[%s6082_s14] sm:$0x3] }
  0x73   : > { %v3666_v23 = vsel %vm2351_vm2, %v3660_v22, 0 }
  0x74   : > { %3675 = vmatpush.bf16.msra.mxu1 %v3666_v23 }
  0x82   : > { %4446 = vmatmul.msk.bf16.gmra.mxu1 %vm778_vm1, %v4521_v24  ;;  %4387 = vmatmul.msk.bf16.gmra.mxu0 %vm778_vm1, %v4534_v25 }
  0x92   : > { %4447 = vmatmul.msk.bf16.gmra.mxu1 %vm778_vm1, %v4522_v26  ;;  %4388 = vmatmul.msk.bf16.gmra.mxu0 %vm778_vm1, %v4535_v27  ;;  %v6090_v26 = vmov 0.0  }
  0x9f   : > { %v4805_v30 = vpop.f32.mrf.mxu1  ;;  %v828_v31 = vpop.f32.mrf.mxu0 }
  0xa2   : > { %4448 = vmatmul.msk.bf16.gmra.mxu1 %vm778_vm1, %v4523_v28  ;;  %4389 = vmatmul.msk.bf16.gmra.mxu0 %vm778_vm1, %v4536_v29 }
  0xa7   : > { %v885_v32 = vpop.f32.mrf.mxu1  ;;  %v830_v33 = vpop.f32.mrf.mxu0 }
  0xaf   : > { %v1002_v36 = vpop.f32.mrf.mxu1  ;;  %v833_v37 = vpop.f32.mrf.mxu0 }
  0xb0   : > { %v1003_v40 = vadd.f32 %v1002_v36, %v828_v31  ;;  %v2273_v36 = vld [vmem:[%s6076_s8] sm:$0x3] }
  0xb2   : > { %4449 = vmatmul.msk.bf16.gmra.mxu1 %vm778_vm1, %v4524_v34  ;;  %4390 = vmatmul.msk.bf16.gmra.mxu0 %vm778_vm1, %v4537_v35 }
  0xb7   : > { %v1004_v38 = vpop.f32.mrf.mxu1  ;;  %v835_v39 = vpop.f32.mrf.mxu0 }
  0xb8   : > { %v1005_v41 = vadd.f32 %v1004_v38, %v830_v33 }
  0xba   : > { %v1061_v42 = vpack.c.bf16 %v1005_v41, %v1003_v40 }
  0xbc   : > { %2290 = vrot.lane.b32.xlu0 %v1061_v42, %s4607_s22 }
  0xbf   : > { %v1007_v45 = vpop.f32.mrf.mxu1  ;;  %v838_v46 = vpop.f32.mrf.mxu0 }
  0xc0   : > { %v1008_v49 = vadd.f32 %v1007_v45, %v833_v37  ;;  %v2353_v37 = vsel %vm2351_vm2, %v2273_v36, 0 }
  0xc1   : > { %2362 = vmatpush.bf16.msrb.mxu2 %v2353_v37 }
  0xc2   : > { %4450 = vmatmul.msk.bf16.gmra.mxu1 %vm778_vm1, %v4525_v43  ;;  %4391 = vmatmul.msk.bf16.gmra.mxu0 %vm778_vm1, %v4538_v44 }
  0xc7   : > { %v1009_v47 = vpop.f32.mrf.mxu1  ;;  %v840_v48 = vpop.f32.mrf.mxu0 }
  0xc8   : > { %v1010_v50 = vadd.f32 %v1009_v47, %v835_v39 }
  0xca   : > { %v1062_v51 = vpack.c.bf16 %v1010_v50, %v1008_v49 }
  0xcc   : > { %2292 = vrot.lane.b32.xlu0 %v1062_v51, %s4607_s22 }
  0xcf   : > { %v1012_v53 = vpop.f32.mrf.mxu1  ;;  %v843_v54 = vpop.f32.mrf.mxu0 }
  0xd0   : > { %v1013_v61 = vadd.f32 %v1012_v53, %v838_v46 }
  0xd2   : > { %4451 = vmatmul.msk.bf16.gmra.mxu1 %vm778_vm1, %v4526_v52  ;;  %1345 = vmatmul.bf16.vlgmr.msrb.gmra.mxu0 %v6088_v60 }
  0xd7   : > { %v1014_v57 = vpop.f32.mrf.mxu1  ;;  %v845_v58 = vpop.f32.mrf.mxu0 }
  0xd8   : > { %v1015_v62 = vadd.f32 %v1014_v57, %v840_v48 }
  0xda   : > { %v1063_v63 = vpack.c.bf16 %v1015_v62, %v1013_v61 }
  0xdc   : > { %2294 = vrot.lane.b32.xlu1 %v1063_v63, %s4607_s22 }
  0xdf   : > { %v1017_v2 = vpop.f32.mrf.mxu1  ;;  %v848_v3 = vpop.f32.mrf.mxu0 }
  0xe0   : > { %v1018_v6 = vadd.f32 %v1017_v2, %v843_v54 }
  0xe2   : > { %4452 = vmatmul.msk.bf16.gmra.mxu1 %vm778_vm1, %v944_v1  ;;  %1350 = vmatmul.bf16.gmra.mxu0 %v6088_v60 }
  0xe7   : > { %v1019_v4 = vpop.f32.mrf.mxu1  ;;  %v850_v5 = vpop.f32.mrf.mxu0 }
  0xe8   : > { %v1020_v7 = vadd.f32 %v1019_v4, %v845_v58 }
  0xea   : > { %v1064_v8 = vpack.c.bf16 %v1020_v7, %v1018_v6 }
  0xec   : > { %2296 = vrot.lane.b32.xlu1 %v1064_v8, %s4607_s22 }
  0xef   : > { %v1022_v9 = vpop.f32.mrf.mxu1  ;;  %v853_v10 = vpop.f32.mrf.mxu0 }
  0xf0   : > { %v1023_v13 = vadd.f32 %v1022_v9, %v848_v3 }
  0xf2   : > { %1355 = vmatmul.bf16.gmra.mxu0 %v6088_v60 }
  0xf7   : > { %v1024_v11 = vpop.f32.mrf.mxu1  ;;  %v855_v12 = vpop.f32.mrf.mxu0 }
  0xf8   : > { %v1025_v14 = vadd.f32 %v1024_v11, %v850_v5 }
  0xfa   : > { %v1065_v15 = vpack.c.bf16 %v1025_v14, %v1023_v13 }
  0xfc   : > { %2298 = vrot.lane.b32.xlu1 %v1065_v15, %s4607_s22 }
  0xff   : > { %v1027_v16 = vpop.f32.mrf.mxu1  ;;  %v858_v17 = vpop.f32.mrf.mxu0 }
 0x100   : > { %v4846_v18 = vadd.f32 %v1027_v16, %v853_v10 }
 0x102   : > { %1360 = vmatmul.bf16.gmra.mxu0 %v6088_v60 }
 0x107   : > { %v1029_v19 = vpop.f32.mrf.mxu1  ;;  %v860_v20 = vpop.f32.mrf.mxu0 }
 0x108   : > { %v4849_v21 = vadd.f32 %v1029_v19, %v855_v12 }
 0x10a   : > { %vm1157_vm3 = vcmp.ge.f32.partialorder %v4849_v21, 0.0  ;;  %v1180_v24 = vmul.f32 0.1, %v4849_v21 }
 0x10c   : > { %v1203_v25 = vsel %vm1157_vm3, %v4849_v21, %v1180_v24  ;;  %v1366_v24 = vpop.f32.mrf.mxu2 }
 0x10d   : > { %v1289_v27 = vpack.c.bf16 %v1203_v25, %v6090_v26 }
 0x10f   : > { %v1032_v28 = vpop.f32.mrf.mxu1  ;;  %4453 = vmatmul.msk.bf16.gmra.mxu2 %vm1297_vm4, %v1289_v27  ;;  %v863_v29 = vpop.f32.mrf.mxu0 }
 0x110   : > { %v4860_v31 = vadd.f32 %v1032_v28, %v858_v17 }
 0x112   : > { %v1181_v35 = vmul.f32 0.1, %v4860_v31  ;;  %vm1158_vm5 = vcmp.ge.f32.partialorder %v4860_v31, 0.0 }
 0x114   : > { %v1204_v39 = vsel %vm1158_vm5, %v4860_v31, %v1181_v35  ;;  %v1837_v35 = vld [vmem:[%s6074_s6] sm:$0xf] }
 0x115   : > { %v1875_v36 = vsel %vm815_vm0, %v1837_v35, 0 }
 0x116   : > { %1884 = vmatpush.bf16.msrb.mxu3 %v1875_v36 }
 0x117   : > { %v1034_v32 = vpop.f32.mrf.mxu1  ;;  %v865_v33 = vpop.f32.mrf.mxu0 }
 0x118   : > { %v4862_v34 = vadd.f32 %v1034_v32, %v860_v20 }
 0x11a   : > { %vm1159_vm6 = vcmp.ge.f32.partialorder %v4862_v34, 0.0  ;;  %v1182_v38 = vmul.f32 0.1, %v4862_v34 }
 0x11c   : > { %v1205_v40 = vsel %vm1159_vm6, %v4862_v34, %v1182_v38  ;;  %v1368_v38 = vpop.f32.mrf.mxu2 }
 0x11d   : > { %v1290_v41 = vpack.c.bf16 %v1205_v40, %v1204_v39 }
 0x11f   : > { %v1037_v42 = vpop.f32.mrf.mxu1  ;;  %4454 = vmatmul.msk.bf16.gmra.mxu2 %vm1297_vm4, %v1290_v41  ;;  %v868_v43 = vpop.f32.mrf.mxu0 }
 0x120   : > { %v4875_v44 = vadd.f32 %v1037_v42, %v863_v29 }
 0x122   : > { %v1183_v48 = vmul.f32 0.1, %v4875_v44  ;;  %vm1160_vm7 = vcmp.ge.f32.partialorder %v4875_v44, 0.0 }
 0x124   : > { %v1206_v50 = vsel %vm1160_vm7, %v4875_v44, %v1183_v48 }
 0x127   : > { %v1039_v45 = vpop.f32.mrf.mxu1  ;;  %v870_v46 = vpop.f32.mrf.mxu0 }
 0x128   : > { %v4877_v47 = vadd.f32 %v1039_v45, %v865_v33 }
 0x12a   : > { %vm1161_vm8 = vcmp.ge.f32.partialorder %v4877_v47, 0.0  ;;  %v1184_v49 = vmul.f32 0.1, %v4877_v47 }
 0x12c   : > { %v1207_v51 = vsel %vm1161_vm8, %v4877_v47, %v1184_v49 }
 0x12d   : > { %v1291_v52 = vpack.c.bf16 %v1207_v51, %v1206_v50 }
 0x12e   : > { %v2291_v53 = vpop.permute.xlu0 %2290 }
 0x12f   : > { %v1042_v54 = vpop.f32.mrf.mxu1  ;;  %4455 = vmatmul.msk.bf16.gmra.mxu2 %vm1297_vm4, %v1291_v52  ;;  %4493 = vmatmul.msk.bf16.vlgmr.msra.gmra.mxu1 %vm2314_vm9, %v2291_v53  ;;  %v873_v55 = vpop.f32.mrf.mxu0 }
 0x130   : > { %v4887_v56 = vadd.f32 %v1042_v54, %v868_v43 }
 0x132   : > { %v1185_v59 = vmul.f32 0.1, %v4887_v56  ;;  %vm1162_vm10 = vcmp.ge.f32.partialorder %v4887_v56, 0.0 }
 0x134   : > { %v1208_v63 = vsel %vm1162_vm10, %v4887_v56, %v1185_v59 }
 0x137   : > { %v1044_v57 = vpop.f32.mrf.mxu1  ;;  %v875_v61 = vpop.f32.mrf.mxu0 }
 0x138   : > { %v4889_v58 = vadd.f32 %v1044_v57, %v870_v46  ;;  %v1066_v57 = vpack.c.bf16 %v4849_v21, %v4846_v18 }
 0x13a   : > { %vm1163_vm11 = vcmp.ge.f32.partialorder %v4889_v58, 0.0  ;;  %v1186_v62 = vmul.f32 0.1, %v4889_v58 }
 0x13c   : > { %v1209_v0 = vsel %vm1163_vm11, %v4889_v58, %v1186_v62 }
 0x13d   : > { %v1292_v1 = vpack.c.bf16 %v1209_v0, %v1208_v63  ;;  %v1067_v63 = vpack.c.bf16 %v4862_v34, %v4860_v31 }
 0x13e   : > { %v2293_v2 = vpop.permute.xlu0 %2292 }
 0x13f   : > { %v1047_v3 = vpop.f32.mrf.mxu1  ;;  %4456 = vmatmul.msk.bf16.vlgmr.msra.gmra.mxu3 %vm1297_vm4, %v1292_v1  ;;  %4467 = vmatmul.msk.bf16.vlgmr.msrb.gmra.mxu2 %vm2314_vm9, %v2291_v53  ;;  %v878_v4 = vpop.f32.mrf.mxu0 }
 0x140   : > { %4494 = vmatmul.msk.bf16.gmra.mxu1 %vm2314_vm9, %v2293_v2  ;;  %v4900_v5 = vadd.f32 %v1047_v3, %v873_v55 }
 0x142   : > { %v1187_v8 = vmul.f32 0.1, %v4900_v5  ;;  %vm1164_vm12 = vcmp.ge.f32.partialorder %v4900_v5, 0.0 }
 0x144   : > { %v1210_v10 = vsel %vm1164_vm12, %v4900_v5, %v1187_v8  ;;  %v1068_v8 = vpack.c.bf16 %v4877_v47, %v4875_v44 }
 0x147   : > { %v1049_v6 = vpop.f32.mrf.mxu1  ;;  %v880_v12 = vpop.f32.mrf.mxu0 }
 0x148   : > { %v4902_v7 = vadd.f32 %v1049_v6, %v875_v61 }
 0x14a   : > { %vm1165_vm13 = vcmp.ge.f32.partialorder %v4902_v7, 0.0  ;;  %v1188_v9 = vmul.f32 0.1, %v4902_v7 }
 0x14c   : > { %v1211_v11 = vsel %vm1165_vm13, %v4902_v7, %v1188_v9 }
 0x14d   : > { %v1293_v13 = vpack.c.bf16 %v1211_v11, %v1210_v10 }
 0x14e   : > { %v2295_v14 = vpop.permute.xlu1 %2294 }
 0x14f   : > { %v1052_v15 = vpop.f32.mrf.mxu1  ;;  %4457 = vmatmul.msk.bf16.gmra.mxu3 %vm1297_vm4, %v1293_v13  ;;  %4468 = vmatmul.msk.bf16.gmra.mxu2 %vm2314_vm9, %v2293_v2  ;;  %v1346_v17 = vpop.f32.mrf.mxu0 }
 0x150   : > { %4495 = vmatmul.msk.bf16.gmra.mxu1 %vm2314_vm9, %v2295_v14  ;;  %v4913_v16 = vadd.f32 %v1052_v15, %v878_v4 }
 0x152   : > { %v1189_v22 = vmul.f32 0.1, %v4913_v16  ;;  %vm1166_vm14 = vcmp.ge.f32.partialorder %v4913_v16, 0.0 }
 0x154   : > { %v1212_v25 = vsel %vm1166_vm14, %v4913_v16, %v1189_v22 }
 0x157   : > { %v1054_v19 = vpop.f32.mrf.mxu1  ;;  %v1348_v28 = vpop.f32.mrf.mxu0 }
 0x158   : > { %v4915_v20 = vadd.f32 %v1054_v19, %v880_v12  ;;  %v1069_v19 = vpack.c.bf16 %v4889_v58, %v4887_v56 }
 0x15a   : > { %vm1167_vm15 = vcmp.ge.f32.partialorder %v4915_v20, 0.0  ;;  %v1190_v23 = vmul.f32 0.1, %v4915_v20  ;;  %v1071_v28 = vpack.c.bf16 %v4915_v20, %v4913_v16 }
 0x15c   : > { %v1213_v27 = vsel %vm1167_vm15, %v4915_v20, %v1190_v23 }
 0x15d   : > { %v1294_v29 = vpack.c.bf16 %v1213_v27, %v1212_v25  ;;  %v1070_v27 = vpack.c.bf16 %v4902_v7, %v4900_v5 }
 0x15e   : > { %v2297_v32 = vpop.permute.xlu1 %2296 }
 0x15f   : > { %v1057_v33 = vpop.f32.mrf.mxu1  ;;  %4458 = vmatmul.msk.bf16.gmra.mxu3 %vm1297_vm4, %v1294_v29  ;;  %4469 = vmatmul.msk.bf16.gmra.mxu2 %vm2314_vm9, %v2295_v14  ;;  %v1351_v39 = vpop.f32.mrf.mxu0 }
 0x160   : > { %4496 = vmatmul.msk.bf16.gmra.mxu1 %vm2314_vm9, %v2297_v32  ;;  %v4931_v37 = vadd.f32 %v1057_v33, %v4805_v30 }
 0x162   : > { %v1191_v40 = vmul.f32 0.1, %v4931_v37  ;;  %vm1168_vm1 = vcmp.ge.f32.partialorder %v4931_v37, 0.0  ;;  %v1072_v39 = vpack.c.bf16 %v4931_v37, %v4931_v37 }
 0x164   : > { %v1214_v42 = vsel %vm1168_vm1, %v4931_v37, %v1191_v40  ;;  %v1073_v40 = vlaneseq }
 0x165   : > { %v1295_v45 = vpack.c.bf16 %v1214_v42, %v1214_v42 }
 0x167   : > { %v1059_v41 = vpop.f32.mrf.mxu1  ;;  %v1353_v43 = vpop.f32.mrf.mxu0 }
 0x16e   : > { %v2299_v46 = vpop.permute.xlu1 %2298 }
 0x16f   : > { %4459 = vmatmul.msk.bf16.gmra.mxu3 %vm1297_vm4, %v1295_v45  ;;  %4470 = vmatmul.msk.bf16.gmra.mxu2 %vm2314_vm9, %v2297_v32  ;;  %v1356_v30 = vpop.f32.mrf.mxu0  ;;  %v2688_v45 = vld [vmem:[%s6078_s10] sm:$0xf] }
 0x170   : > { %4497 = vmatmul.msk.bf16.gmra.mxu1 %vm2314_vm9, %v2299_v46  ;;  %v2726_v30 = vsel %vm815_vm0, %v2688_v45, 0 }
 0x171   : > { %2735 = vmatpush.bf16.msra.mxu3 %v2726_v30 }
 0x177   : > { %v1358_v48 = vpop.f32.mrf.mxu0 }
 0x17f   : > { %4471 = vmatmul.msk.bf16.gmra.mxu2 %vm2314_vm9, %v2299_v46  ;;  %1885 = vmatmul.bf16.vlgmr.msrb.gmra.mxu3 %v6088_v60  ;;  %v1361_v49 = vpop.f32.mrf.mxu0  ;;  %v5045_v46 = vshrl.u32 %v1073_v40, 7 }
 0x181   : > { %vm1567_vm2 = vcmp.lt.s32.totalorder %v5045_v46, 1  ;;  %vm1428_vm3 = vcmp.lt.s32.totalorder %v5045_v46, 2 }
 0x187   : > { %v1363_v50 = vpop.f32.mrf.mxu0 }
 0x18f   : > { %1890 = vmatmul.bf16.gmra.mxu3 %v6088_v60 }
 0x192   : > { %v4942_v51 = vpop.f32.mrf.mxu2 }
 0x193   : > { %1495 = vrot.lane.b32.xlu2 %v4942_v51, %s4607_s22 }
 0x19a   : > { %v4946_v52 = vpop.f32.mrf.mxu2 }
 0x19b   : > { %1497 = vrot.lane.b32.xlu2 %v4946_v52, %s4607_s22  ;;  %1636 = vrot.lane.b32.xlu0 %v4946_v52, %s4610_s19  ;;  %v1416_v49 = vrot.slane %v4946_v52, 6 }
 0x19f   : > { %1895 = vmatmul.bf16.gmra.mxu3 %v6088_v60 }
 0x1a2   : > { %v4953_v53 = vpop.f32.mrf.mxu2 }
 0x1a3   : > { %1499 = vrot.lane.b32.xlu2 %v4953_v53, %s4607_s22  ;;  %1638 = vrot.lane.b32.xlu1 %v4953_v53, %s4610_s19 }
 0x1aa   : > { %v4959_v54 = vpop.f32.mrf.mxu2 }
 0x1ab   : > { %1640 = vrot.lane.b32.xlu2 %v4959_v54, %s4610_s19  ;;  %1501 = vrot.lane.b32.xlu0 %v4959_v54, %s4607_s22 }
 0x1ac   : > { %v3677_v55 = vpop.f32.mrf.mxu1 }
 0x1ad   : > { %v1415_v55 = vrot.slane %v4942_v51, 6 }
 0x1af   : > { %1900 = vmatmul.bf16.gmra.mxu3 %v6088_v60 }
 0x1b2   : > { %v4968_v59 = vpop.f32.mrf.mxu2 }
 0x1b3   : > { %1503 = vrot.lane.b32.xlu1 %v4968_v59, %s4607_s22  ;;  %2300 = vrot.lane.b32.xlu0 %v1066_v57, %s4607_s22 }
 0x1b4   : > { %v3679_v61 = vpop.f32.mrf.mxu1 }
 0x1ba   : > { %v4973_v62 = vpop.f32.mrf.mxu2 }
 0x1bb   : > { %1505 = vrot.lane.b32.xlu2 %v4973_v62, %s4607_s22  ;;  %1644 = vrot.lane.b32.xlu1 %v4973_v62, %s4610_s19 }
 0x1bc   : > { %1642 = vrot.lane.b32.xlu0 %v4968_v59, %s4610_s19 }
 0x1bd   : > { %v3682_v18 = vpop.f32.mrf.mxu1 }
 0x1bf   : > { %1905 = vmatmul.bf16.gmra.mxu3 %v6088_v60 }
 0x1c2   : > { %v4984_v0 = vpop.f32.mrf.mxu3  ;;  %v2364_v1 = vpop.f32.mrf.mxu2 }
 0x1c3   : > { %2302 = vrot.lane.b32.xlu2 %v1067_v63, %s4607_s22  ;;  %v1440_v63 = vsel %vm1428_vm3, %v1415_v55, %v1416_v49 }
 0x1c4   : > { %1507 = vrot.lane.b32.xlu0 %v4984_v0, %s4607_s22 }
 0x1c5   : > { %v3684_v2 = vpop.f32.mrf.mxu1 }
 0x1c6   : > { %v5059_v2 = vld [vmem:[%s6073_s5] ss:$0 sm:$0xff] }
 0x1ca   : > { %v4989_v3 = vpop.f32.mrf.mxu3  ;;  %v2366_v4 = vpop.f32.mrf.mxu2 }
 0x1cb   : > { %1646 = vrot.lane.b32.xlu2 %v4984_v0, %s4610_s19  ;;  %1509 = vrot.lane.b32.xlu1 %v4989_v3, %s4607_s22 }
 0x1cc   : > { %1648 = vrot.lane.b32.xlu0 %v4989_v3, %s4610_s19 }
 0x1cd   : > { %v3687_v6 = vpop.f32.mrf.mxu1 }
 0x1d2   : > { %v4999_v9 = vpop.f32.mrf.mxu3  ;;  %v2369_v10 = vpop.f32.mrf.mxu2 }
 0x1d3   : > { %1511 = vrot.lane.b32.xlu2 %v4999_v9, %s4607_s22  ;;  %2304 = vrot.lane.b32.xlu1 %v1068_v8, %s4607_s22 }
 0x1d5   : > { %v3689_v11 = vpop.f32.mrf.mxu1 }
 0x1da   : > { %v5004_v12 = vpop.f32.mrf.mxu3  ;;  %v2371_v13 = vpop.f32.mrf.mxu2 }
 0x1db   : > { %1652 = vrot.lane.b32.xlu2 %v5004_v12, %s4610_s19  ;;  %1650 = vrot.lane.b32.xlu1 %v4999_v9, %s4610_s19 }
 0x1dc   : > { %1513 = vrot.lane.b32.xlu0 %v5004_v12, %s4607_s22 }
 0x1dd   : > { %v3692_v14 = vpop.f32.mrf.mxu1 }
 0x1e2   : > { %v5012_v15 = vpop.f32.mrf.mxu3  ;;  %v2374_v17 = vpop.f32.mrf.mxu2 }
 0x1e3   : > { %1515 = vrot.lane.b32.xlu1 %v5012_v15, %s4607_s22  ;;  %v1417_v17 = vrot.slane %v4953_v53, 6 }
 0x1e4   : > { %2306 = vrot.lane.b32.xlu0 %v1069_v19, %s4607_s22 }
 0x1e5   : > { %v3694_v22 = vpop.f32.mrf.mxu1 }
 0x1e6   : > { %v1439_v22 = vsel %vm1428_vm3, %v1416_v49, %v1417_v17 }
 0x1ea   : > { %v5019_v23 = vpop.f32.mrf.mxu3  ;;  %v2376_v24 = vpop.f32.mrf.mxu2 }
 0x1eb   : > { %1517 = vrot.lane.b32.xlu2 %v5019_v23, %s4607_s22  ;;  %1656 = vrot.lane.b32.xlu1 %v5019_v23, %s4610_s19 }
 0x1ec   : > { %1654 = vrot.lane.b32.xlu0 %v5012_v15, %s4610_s19 }
 0x1ed   : > { %v3697_v25 = vpop.f32.mrf.mxu1  ;;  %v1496_v35 = vpop.permute.xlu2 %1495 }
 0x1ee   : > { %v1554_v50 = vrot.slane %v1496_v35, 7 }
 0x1f2   : > { %v5031_v29 = vpop.f32.mrf.mxu3  ;;  %v2379_v32 = vpop.f32.mrf.mxu2 }
 0x1f3   : > { %2308 = vrot.lane.b32.xlu2 %v1070_v27, %s4607_s22  ;;  %2310 = vrot.lane.b32.xlu1 %v1071_v28, %s4607_s22  ;;  %v1418_v32 = vrot.slane %v4959_v54, 6 }
 0x1f4   : > { %1519 = vrot.lane.b32.xlu0 %v5031_v29, %s4607_s22 }
 0x1f5   : > { %v3699_v33 = vpop.f32.mrf.mxu1  ;;  %v1498_v41 = vpop.permute.xlu2 %1497  ;;  %v1438_v53 = vsel %vm1428_vm3, %v1417_v17, %v1418_v32 }
 0x1f6   : > { %v1555_v48 = vrot.slane %v1498_v41, 7 }
 0x1f8   : > { %v1579_v57 = vsel %vm1567_vm2, %v1554_v50, %v1555_v48  ;;  %v1420_v50 = vrot.slane %v4973_v62, 6 }
 0x1f9   : > { %v1602_v1 = vadd.f32 %v1579_v57, %v1440_v63 }
 0x1fa   : > { %v1403_v36 = vpop.f32.mrf.mxu3  ;;  %v2381_v38 = vpop.f32.mrf.mxu2 }
 0x1fb   : > { %1658 = vrot.lane.b32.xlu2 %v5031_v29, %s4610_s19 }
 0x1fc   : > { %2312 = vrot.lane.b32.xlu0 %v1072_v39, %s4607_s22 }
 0x1fd   : > { %v1500_v8 = vpop.permute.xlu2 %1499 }
 0x1fe   : > { %v1556_v11 = vrot.slane %v1500_v8, 7 }
 0x200   : > { %v1578_v19 = vsel %vm1567_vm2, %v1555_v48, %v1556_v11 }
 0x201   : > { %v1603_v28 = vadd.f32 %v1578_v19, %v1439_v22 }
 0x202   : > { %v2384_v42 = vpop.f32.mrf.mxu2  ;;  %v1886_v43 = vpop.f32.mrf.mxu3 }
 0x205   : > { %v1641_v27 = vpop.permute.xlu2 %1640 }
 0x20a   : > { %v2386_v61 = vpop.f32.mrf.mxu2  ;;  %v1888_v18 = vpop.f32.mrf.mxu3 }
 0x20b   : > { %v1419_v61 = vrot.slane %v4968_v59, 6 }
 0x20d   : > { %v1637_v52 = vpop.permute.xlu0 %1636  ;;  %v1436_v62 = vsel %vm1428_vm3, %v1419_v61, %v1420_v50 }
 0x20e   : > { %v1694_v4 = vadd.f32 %v1637_v52, %v1602_v1 }
 0x210   : > { %v1721_v6 = vadd.f32 %v5059_v2, %v1694_v4 }
 0x212   : > { %v1767_v51 = vmul.f32 0.1, %v1721_v6  ;;  %vm1744_vm5 = vcmp.ge.f32.partialorder %v1721_v6, 0.0  ;;  %v1891_v10 = vpop.f32.mrf.mxu3 }
 0x214   : > { %v1790_v13 = vsel %vm1744_vm5, %v1721_v6, %v1767_v51  ;;  %v1437_v51 = vsel %vm1428_vm3, %v1418_v32, %v1419_v61 }
 0x215   : > { %v1830_v14 = vpack.c.bf16 %v1790_v13, %v6090_v26  ;;  %v1639_v24 = vpop.permute.xlu1 %1638  ;;  %v1506_v42 = vpop.permute.xlu2 %1505 }
 0x216   : > { %v1695_v33 = vadd.f32 %v1639_v24, %v1603_v28  ;;  %v1559_v55 = vrot.slane %v1506_v42, 7  ;;  %v1421_v28 = vrot.slane %v4984_v0, 6  ;;  %v1422_v0 = vrot.slane %v4989_v3, 6 }
 0x217   : > { %4460 = vmatmul.msk.bf16.gmra.mxu3 %vm1297_vm4, %v1830_v14 }
 0x218   : > { %v1722_v39 = vadd.f32 %v5059_v2, %v1695_v33 }
 0x21a   : > { %v1893_v25 = vpop.f32.mrf.mxu3  ;;  %v1768_v45 = vmul.f32 0.1, %v1722_v39  ;;  %vm1745_vm6 = vcmp.ge.f32.partialorder %v1722_v39, 0.0 }
 0x21c   : > { %v1791_v18 = vsel %vm1745_vm6, %v1722_v39, %v1768_v45  ;;  %vm2107_vm6 = vcmp.lt.s32.totalorder %v5045_v46, 3 }
 0x21d   : > { %v1502_v35 = vpop.permute.xlu0 %1501  ;;  %v2303_v59 = vpop.permute.xlu2 %2302 }
 0x21e   : > { %v1557_v36 = vrot.slane %v1502_v35, 7 }
 0x220   : > { %v1577_v38 = vsel %vm1567_vm2, %v1556_v11, %v1557_v36 }
 0x221   : > { %v1604_v40 = vadd.f32 %v1577_v38, %v1438_v53  ;;  %v1435_v38 = vsel %vm1428_vm3, %v1420_v50, %v1421_v28 }
 0x222   : > { %v1896_v41 = vpop.f32.mrf.mxu3 }
 0x223   : > { %v1696_v43 = vadd.f32 %v1641_v27, %v1604_v40 }
 0x225   : > { %v1504_v30 = vpop.permute.xlu1 %1503  ;;  %v1723_v48 = vadd.f32 %v5059_v2, %v1696_v43  ;;  %v2301_v49 = vpop.permute.xlu0 %2300 }
 0x226   : > { %v1558_v54 = vrot.slane %v1504_v30, 7  ;;  %4472 = vmatmul.msk.bf16.gmra.mxu2 %vm2314_vm9, %v2301_v49  ;;  %4498 = vmatmul.msk.bf16.gmra.mxu1 %vm2314_vm9, %v2301_v49  ;;  %v1647_v35 = vpop.permute.xlu2 %1646 }
 0x227   : > { %vm1746_vm7 = vcmp.ge.f32.partialorder %v1723_v48, 0.0  ;;  %v1769_v57 = vmul.f32 0.1, %v1723_v48 }
 0x228   : > { %v1575_v1 = vsel %vm1567_vm2, %v1558_v54, %v1559_v55  ;;  %v1576_v4 = vsel %vm1567_vm2, %v1557_v36, %v1558_v54 }
 0x229   : > { %v1792_v63 = vsel %vm1746_vm7, %v1723_v48, %v1769_v57  ;;  %v1606_v8 = vadd.f32 %v1575_v1, %v1436_v62  ;;  %v1605_v11 = vadd.f32 %v1576_v4, %v1437_v51  ;;  %v1434_v48 = vsel %vm1428_vm3, %v1421_v28, %v1422_v0 }
 0x22a   : > { %v1831_v52 = vpack.c.bf16 %v1792_v63, %v1791_v18  ;;  %v1898_v6 = vpop.f32.mrf.mxu3 }
 0x22c   : > { %4461 = vmatmul.msk.bf16.gmra.mxu3 %vm1297_vm4, %v1831_v52  ;;  %v1423_v52 = vrot.slane %v4999_v9, 6 }
 0x22d   : > { %v1645_v10 = vpop.permute.xlu1 %1644 }
 0x22e   : > { %v1698_v13 = vadd.f32 %v1645_v10, %v1606_v8  ;;  %v1643_v14 = vpop.permute.xlu0 %1642  ;;  %v1512_v49 = vpop.permute.xlu2 %1511 }
 0x22f   : > { %v1697_v17 = vadd.f32 %v1643_v14, %v1605_v11  ;;  %v1562_v4 = vrot.slane %v1512_v49, 7  ;;  %v1433_v11 = vsel %vm1428_vm3, %v1422_v0, %v1423_v52  ;;  %v1424_v14 = vrot.slane %v5004_v12, 6 }
 0x230   : > { %v1725_v19 = vadd.f32 %v5059_v2, %v1698_v13 }
 0x231   : > { %v1724_v22 = vadd.f32 %v5059_v2, %v1697_v17 }
 0x232   : > { %v1901_v24 = vpop.f32.mrf.mxu3  ;;  %v1771_v25 = vmul.f32 0.1, %v1725_v19  ;;  %vm1748_vm8 = vcmp.ge.f32.partialorder %v1725_v19, 0.0 }
 0x233   : > { %v1770_v27 = vmul.f32 0.1, %v1724_v22  ;;  %vm1747_vm10 = vcmp.ge.f32.partialorder %v1724_v22, 0.0 }
 0x234   : > { %v1794_v53 = vsel %vm1748_vm8, %v1725_v19, %v1771_v25  ;;  %v1432_v25 = vsel %vm1428_vm3, %v1423_v52, %v1424_v14 }
 0x235   : > { %v1793_v36 = vsel %vm1747_vm10, %v1724_v22, %v1770_v27 }
 0x236   : > { %v1508_v33 = vpop.permute.xlu0 %1507  ;;  %4473 = vmatmul.msk.bf16.gmra.mxu2 %vm2314_vm9, %v2303_v59  ;;  %4499 = vmatmul.msk.bf16.gmra.mxu1 %vm2314_vm9, %v2303_v59  ;;  %v1832_v41 = vpack.c.bf16 %v1794_v53, %v1793_v36  ;;  %v1653_v13 = vpop.permute.xlu2 %1652 }
 0x237   : > { %v1560_v32 = vrot.slane %v1508_v33, 7 }
 0x239   : > { %v1574_v39 = vsel %vm1567_vm2, %v1559_v55, %v1560_v32 }
 0x23a   : > { %v1607_v40 = vadd.f32 %v1574_v39, %v1435_v38  ;;  %v1903_v42 = vpop.f32.mrf.mxu3 }
 0x23b   : > { %v1425_v42 = vrot.slane %v5012_v15, 6 }
 0x23c   : > { %4462 = vmatmul.msk.bf16.gmra.mxu3 %vm1297_vm4, %v1832_v41  ;;  %v1699_v43 = vadd.f32 %v1647_v35, %v1607_v40  ;;  %v1426_v40 = vrot.slane %v5019_v23, 6 }
 0x23d   : > { %v1510_v45 = vpop.permute.xlu1 %1509 }
 0x23e   : > { %v1561_v30 = vrot.slane %v1510_v45, 7  ;;  %v1726_v50 = vadd.f32 %v5059_v2, %v1699_v43  ;;  %v1649_v57 = vpop.permute.xlu0 %1648  ;;  %v1430_v23 = vsel %vm1428_vm3, %v1425_v42, %v1426_v40 }
 0x240   : > { %v1573_v54 = vsel %vm1567_vm2, %v1560_v32, %v1561_v30  ;;  %v1772_v1 = vmul.f32 0.1, %v1726_v50  ;;  %vm1749_vm11 = vcmp.ge.f32.partialorder %v1726_v50, 0.0  ;;  %v1572_v51 = vsel %vm1567_vm2, %v1561_v30, %v1562_v4 }
 0x241   : > { %v1608_v55 = vadd.f32 %v1573_v54, %v1434_v48  ;;  %v1609_v9 = vadd.f32 %v1572_v51, %v1433_v11 }
 0x242   : > { %v1906_v61 = vpop.f32.mrf.mxu3  ;;  %v1795_v8 = vsel %vm1749_vm11, %v1726_v50, %v1772_v1  ;;  %v1431_v50 = vsel %vm1428_vm3, %v1424_v14, %v1425_v42 }
 0x243   : > { %v1700_v18 = vadd.f32 %v1649_v57, %v1608_v55 }
 0x245   : > { %v1727_v3 = vadd.f32 %v5059_v2, %v1700_v18  ;;  %v2305_v63 = vpop.permute.xlu1 %2304  ;;  %v1518_v35 = vpop.permute.xlu2 %1517 }
 0x246   : > { %4474 = vmatmul.msk.bf16.gmra.mxu2 %vm2314_vm9, %v2305_v63  ;;  %4500 = vmatmul.msk.bf16.gmra.mxu1 %vm2314_vm9, %v2305_v63  ;;  %v1565_v41 = vrot.slane %v1518_v35, 7 }
 0x247   : > { %vm1750_vm12 = vcmp.ge.f32.partialorder %v1727_v3, 0.0  ;;  %v1773_v6 = vmul.f32 0.1, %v1727_v3 }
 0x249   : > { %v1796_v62 = vsel %vm1750_vm12, %v1727_v3, %v1773_v6  ;;  %v1427_v6 = vrot.slane %v5031_v29, 6 }
 0x24a   : > { %v1833_v59 = vpack.c.bf16 %v1796_v62, %v1795_v8  ;;  %v1908_v10 = vpop.f32.mrf.mxu3 }
 0x24b   : > { %v1429_v10 = vsel %vm1428_vm3, %v1426_v40, %v1427_v6 }
 0x24c   : > { %4463 = vmatmul.msk.bf16.gmra.mxu3 %vm1297_vm4, %v1833_v59 }
 0x24d   : > { %v1651_v17 = vpop.permute.xlu1 %1650  ;;  %v2309_v63 = vpop.permute.xlu2 %2308 }
 0x24e   : > { %v1701_v19 = vadd.f32 %v1651_v17, %v1609_v9  ;;  %v1514_v22 = vpop.permute.xlu0 %1513 }
 0x24f   : > { %v1563_v24 = vrot.slane %v1514_v22, 7 }
 0x250   : > { %v1728_v28 = vadd.f32 %v5059_v2, %v1701_v19 }
 0x251   : > { %v1571_v27 = vsel %vm1567_vm2, %v1562_v4, %v1563_v24 }
 0x252   : > { %v1610_v33 = vadd.f32 %v1571_v27, %v1432_v25  ;;  %v1774_v53 = vmul.f32 0.1, %v1728_v28  ;;  %vm1751_vm13 = vcmp.ge.f32.partialorder %v1728_v28, 0.0 }
 0x254   : > { %v1702_v32 = vadd.f32 %v1653_v13, %v1610_v33  ;;  %v1797_v45 = vsel %vm1751_vm13, %v1728_v28, %v1774_v53  ;;  %v5170_v53 = vld [vmem:[%s6077_s9] ss:$0 sm:$0xff] }
 0x255   : > { %v1516_v36 = vpop.permute.xlu1 %1515  ;;  %v1659_v9 = vpop.permute.xlu2 %1658 }
 0x256   : > { %v1729_v38 = vadd.f32 %v5059_v2, %v1702_v32  ;;  %v1564_v12 = vrot.slane %v1516_v36, 7  ;;  %v2307_v39 = vpop.permute.xlu0 %2306 }
 0x257   : > { %4475 = vmatmul.msk.bf16.gmra.mxu2 %vm2314_vm9, %v2307_v39  ;;  %4501 = vmatmul.msk.bf16.gmra.mxu1 %vm2314_vm9, %v2307_v39 }
 0x258   : > { %vm1752_vm14 = vcmp.ge.f32.partialorder %v1729_v38, 0.0  ;;  %v1775_v0 = vmul.f32 0.1, %v1729_v38  ;;  %v1569_v43 = vsel %vm1567_vm2, %v1564_v12, %v1565_v41  ;;  %v1570_v48 = vsel %vm1567_vm2, %v1563_v24, %v1564_v12 }
 0x259   : > { %v1612_v49 = vadd.f32 %v1569_v43, %v1430_v23  ;;  %v1611_v55 = vadd.f32 %v1570_v48, %v1431_v50 }
 0x25a   : > { %v1798_v30 = vsel %vm1752_vm14, %v1729_v38, %v1775_v0 }
 0x25b   : > { %v1834_v54 = vpack.c.bf16 %v1798_v30, %v1797_v45 }
 0x25d   : > { %4464 = vmatmul.msk.bf16.gmra.mxu3 %vm1297_vm4, %v1834_v54  ;;  %v1657_v15 = vpop.permute.xlu1 %1656 }
 0x25e   : > { %v1704_v57 = vadd.f32 %v1657_v15, %v1612_v49  ;;  %v1655_v61 = vpop.permute.xlu0 %1654 }
 0x25f   : > { %v1703_v18 = vadd.f32 %v1655_v61, %v1611_v55 }
 0x260   : > { %v1731_v3 = vadd.f32 %v5059_v2, %v1704_v57 }
 0x261   : > { %v1730_v1 = vadd.f32 %v5059_v2, %v1703_v18 }
 0x262   : > { %v1777_v52 = vmul.f32 0.1, %v1731_v3  ;;  %vm1754_vm15 = vcmp.ge.f32.partialorder %v1731_v3, 0.0 }
 0x263   : > { %v1776_v4 = vmul.f32 0.1, %v1730_v1  ;;  %vm1753_vm1 = vcmp.ge.f32.partialorder %v1730_v1, 0.0 }
 0x264   : > { %v1800_v51 = vsel %vm1754_vm15, %v1731_v3, %v1777_v52 }
 0x265   : > { %v1799_v59 = vsel %vm1753_vm1, %v1730_v1, %v1776_v4  ;;  %v2311_v22 = vpop.permute.xlu1 %2310 }
 0x266   : > { %v1520_v62 = vpop.permute.xlu0 %1519  ;;  %v1835_v14 = vpack.c.bf16 %v1800_v51, %v1799_v59 }
 0x267   : > { %v1566_v8 = vrot.slane %v1520_v62, 7  ;;  %4476 = vmatmul.msk.bf16.gmra.mxu2 %vm2314_vm9, %v2309_v63  ;;  %4502 = vmatmul.msk.bf16.gmra.mxu1 %vm2314_vm9, %v2309_v63 }
 0x269   : > { %v1568_v11 = vsel %vm1567_vm2, %v1565_v41, %v1566_v8 }
 0x26a   : > { %v1613_v13 = vadd.f32 %v1568_v11, %v1429_v10 }
 0x26c   : > { %v1705_v29 = vadd.f32 %v1659_v9, %v1613_v13 }
 0x26d   : > { %4465 = vmatmul.msk.bf16.gmra.mxu3 %vm1297_vm4, %v1835_v14 }
 0x26e   : > { %v1732_v17 = vadd.f32 %v5059_v2, %v1705_v29  ;;  %v2313_v27 = vpop.permute.xlu0 %2312 }
 0x270   : > { %v1778_v19 = vmul.f32 0.1, %v1732_v17  ;;  %vm1755_vm5 = vcmp.ge.f32.partialorder %v1732_v17, 0.0 }
 0x272   : > { %v1801_v24 = vsel %vm1755_vm5, %v1732_v17, %v1778_v19 }
 0x273   : > { %v1836_v25 = vpack.c.bf16 %v1801_v24, %v1801_v24 }
 0x277   : > { %4477 = vmatmul.msk.bf16.gmra.mxu2 %vm2314_vm9, %v2311_v22  ;;  %4503 = vmatmul.msk.bf16.gmra.mxu1 %vm2314_vm9, %v2311_v22 }
 0x27d   : > { %4466 = vmatmul.msk.bf16.gmra.mxu3 %vm1297_vm4, %v1836_v25 }
 0x287   : > { %4478 = vmatmul.msk.bf16.gmra.mxu2 %vm2314_vm9, %v2313_v27  ;;  %4504 = vmatmul.msk.bf16.gmra.mxu1 %vm2314_vm9, %v2313_v27  ;;  %vm1968_vm9 = vcmp.lt.s32.totalorder %v5045_v46, 6 }
 0x28d   : > { %2736 = vmatmul.bf16.vlgmr.msra.gmra.mxu3 %v6088_v60 }
 0x29a   : > { %v5151_v28 = vpop.f32.mrf.mxu3 }
 0x29b   : > { %2035 = vrot.lane.b32.xlu1 %v5151_v28, %s4607_s22 }
 0x29d   : > { %2741 = vmatmul.bf16.gmra.mxu3 %v6088_v60 }
 0x2a2   : > { %v5156_v2 = vpop.f32.mrf.mxu3 }
 0x2a3   : > { %2176 = vrot.lane.b32.xlu0 %v5156_v2, %s4610_s19  ;;  %2037 = vrot.lane.b32.xlu2 %v5156_v2, %s4607_s22  ;;  %v3702_v33 = vpop.f32.mrf.mxu1 }
 0x2a9   : > { %v2389_v35 = vpop.f32.mrf.mxu2 }
 0x2ab   : > { %v5162_v32 = vpop.f32.mrf.mxu1 }
 0x2ad   : > { %2746 = vmatmul.bf16.gmra.mxu3 %v6088_v60 }
 0x2af   : > { %v5165_v36 = vpop.f32.mrf.mxu3 }
 0x2b0   : > { %2039 = vrot.lane.b32.xlu2 %v5165_v36, %s4607_s22 }
 0x2b1   : > { %v2391_v38 = vpop.f32.mrf.mxu2 }
 0x2b2   : > { %v5175_v12 = vadd.f32 %v5170_v53, %v2391_v38 }
 0x2b3   : > { %v5177_v39 = vpop.f32.mrf.mxu1 }
 0x2b4   : > { %2491 = vrot.lane.b32.xlu1 %v5175_v12, %s4607_s22 }
 0x2b7   : > { %v5181_v40 = vpop.f32.mrf.mxu3 }
 0x2b8   : > { %2180 = vrot.lane.b32.xlu2 %v5181_v40, %s4610_s19  ;;  %2041 = vrot.lane.b32.xlu0 %v5181_v40, %s4607_s22 }
 0x2b9   : > { %v2394_v41 = vpop.f32.mrf.mxu2 }
 0x2ba   : > { %v5193_v0 = vadd.f32 %v5170_v53, %v2394_v41 }
 0x2bb   : > { %v5187_v42 = vpop.f32.mrf.mxu1 }
 0x2bc   : > { %2178 = vrot.lane.b32.xlu1 %v5165_v36, %s4610_s19 }
 0x2bd   : > { %2751 = vmatmul.bf16.gmra.mxu3 %v6088_v60 }
 0x2bf   : > { %v5195_v43 = vpop.f32.mrf.mxu3 }
 0x2c0   : > { %2493 = vrot.lane.b32.xlu0 %v5193_v0, %s4607_s22  ;;  %2043 = vrot.lane.b32.xlu2 %v5195_v43, %s4607_s22 }
 0x2c1   : > { %v2396_v45 = vpop.f32.mrf.mxu2 }
 0x2c2   : > { %v5202_v30 = vadd.f32 %v5170_v53, %v2396_v45 }
 0x2c3   : > { %v5204_v48 = vpop.f32.mrf.mxu1 }
 0x2c4   : > { %2495 = vrot.lane.b32.xlu1 %v5202_v30, %s4607_s22 }
 0x2c7   : > { %v5208_v54 = vpop.f32.mrf.mxu3 }
 0x2c8   : > { %2184 = vrot.lane.b32.xlu2 %v5208_v54, %s4610_s19  ;;  %2045 = vrot.lane.b32.xlu0 %v5208_v54, %s4607_s22 }
 0x2c9   : > { %v2399_v23 = vpop.f32.mrf.mxu2 }
 0x2ca   : > { %v5220_v50 = vadd.f32 %v5170_v53, %v2399_v23 }
 0x2cb   : > { %v5214_v49 = vpop.f32.mrf.mxu1 }
 0x2cc   : > { %2182 = vrot.lane.b32.xlu1 %v5195_v43, %s4610_s19 }
 0x2cd   : > { %2756 = vmatmul.bf16.gmra.mxu3 %v6088_v60 }
 0x2cf   : > { %v5222_v15 = vpop.f32.mrf.mxu3 }
 0x2d0   : > { %2497 = vrot.lane.b32.xlu0 %v5220_v50, %s4607_s22  ;;  %2047 = vrot.lane.b32.xlu2 %v5222_v15, %s4607_s22 }
 0x2d1   : > { %v2401_v55 = vpop.f32.mrf.mxu2 }
 0x2d2   : > { %v5229_v57 = vadd.f32 %v5170_v53, %v2401_v55 }
 0x2d4   : > { %v5231_v61 = vpop.f32.mrf.mxu1  ;;  %2499 = vrot.lane.b32.xlu1 %v5229_v57, %s4607_s22 }
 0x2d7   : > { %v5235_v18 = vpop.f32.mrf.mxu3 }
 0x2d8   : > { %2188 = vrot.lane.b32.xlu2 %v5235_v18, %s4610_s19  ;;  %2049 = vrot.lane.b32.xlu0 %v5235_v18, %s4607_s22 }
 0x2da   : > { %v2404_v3 = vpop.f32.mrf.mxu2 }
 0x2db   : > { %v5246_v1 = vadd.f32 %v5170_v53, %v2404_v3 }
 0x2dc   : > { %v5241_v63 = vpop.f32.mrf.mxu1  ;;  %2186 = vrot.lane.b32.xlu1 %v5222_v15, %s4610_s19 }
 0x2dd   : > { %6099 = vst [vmem:[#allocation3_spill] sm:$0xff] %v5241_v63 }
 0x2e0   : > { %v5248_v52 = vpop.f32.mrf.mxu3  ;;  %2501 = vrot.lane.b32.xlu0 %v5246_v1, %s4607_s22 }
 0x2e1   : > { %2051 = vrot.lane.b32.xlu2 %v5248_v52, %s4607_s22 }
 0x2e2   : > { %v2406_v4 = vpop.f32.mrf.mxu2 }
 0x2e3   : > { %v5255_v6 = vadd.f32 %v5170_v53, %v2406_v4 }
 0x2e4   : > { %v5257_v62 = vpop.f32.mrf.mxu1 }
 0x2e5   : > { %6100 = vst [vmem:[#allocation4_spill] sm:$0xff] %v5257_v62  ;;  %2503 = vrot.lane.b32.xlu1 %v5255_v6, %s4607_s22 }
 0x2e8   : > { %v5261_v8 = vpop.f32.mrf.mxu3 }
 0x2e9   : > { %2192 = vrot.lane.b32.xlu2 %v5261_v8, %s4610_s19  ;;  %2053 = vrot.lane.b32.xlu0 %v5261_v8, %s4607_s22 }
 0x2ea   : > { %v2409_v51 = vpop.f32.mrf.mxu2 }
 0x2eb   : > { %v5272_v10 = vadd.f32 %v5170_v53, %v2409_v51 }
 0x2ec   : > { %v5267_v59 = vpop.f32.mrf.mxu1 }
 0x2ed   : > { %6101 = vst [vmem:[#allocation5_spill] sm:$0xff] %v5267_v59  ;;  %2190 = vrot.lane.b32.xlu1 %v5248_v52, %s4610_s19 }
 0x2f0   : > { %v5274_v11 = vpop.f32.mrf.mxu3 }
 0x2f1   : > { %2505 = vrot.lane.b32.xlu0 %v5272_v10, %s4607_s22  ;;  %2055 = vrot.lane.b32.xlu2 %v5274_v11, %s4607_s22 }
 0x2f2   : > { %v2411_v13 = vpop.f32.mrf.mxu2 }
 0x2f3   : > { %v5281_v9 = vadd.f32 %v5170_v53, %v2411_v13 }
 0x2f4   : > { %v5283_v14 = vpop.f32.mrf.mxu1 }
 0x2f5   : > { %6102 = vst [vmem:[#allocation6_spill] sm:$0xff] %v5283_v14  ;;  %2507 = vrot.lane.b32.xlu1 %v5281_v9, %s4607_s22 }
 0x2f8   : > { %v5287_v29 = vpop.f32.mrf.mxu3 }
 0x2f9   : > { %2196 = vrot.lane.b32.xlu2 %v5287_v29, %s4610_s19  ;;  %2057 = vrot.lane.b32.xlu0 %v5287_v29, %s4607_s22 }
 0x2fa   : > { %v2414_v17 = vpop.f32.mrf.mxu2 }
 0x2fb   : > { %v5298_v22 = vadd.f32 %v5170_v53, %v2414_v17  ;;  %v1956_v17 = vrot.slane %v5156_v2, 2  ;;  %v5331_v2 = vld [vmem:[%s6075_s7] ss:$0 sm:$0xff] }
 0x2fc   : > { %v5293_v19 = vpop.f32.mrf.mxu1 }
 0x2fd   : > { %6103 = vst [vmem:[#allocation7_spill] sm:$0xff] %v5293_v19  ;;  %2194 = vrot.lane.b32.xlu1 %v5274_v11, %s4610_s19  ;;  %v2038_v35 = vpop.permute.xlu2 %2037 }
 0x300   : > { %v5300_v24 = vpop.f32.mrf.mxu3 }
 0x301   : > { %2509 = vrot.lane.b32.xlu0 %v5298_v22, %s4607_s22  ;;  %2059 = vrot.lane.b32.xlu2 %v5300_v24, %s4607_s22 }
 0x302   : > { %v2416_v25 = vpop.f32.mrf.mxu2 }
 0x303   : > { %v5307_v27 = vadd.f32 %v5170_v53, %v2416_v25  ;;  %v2095_v25 = vrot.slane %v2038_v35, 5 }
 0x304   : > { %v5309_v33 = vpop.f32.mrf.mxu1 }
 0x305   : > { %6104 = vst [vmem:[#allocation8_spill] sm:$0xff] %v5309_v33  ;;  %2511 = vrot.lane.b32.xlu1 %v5307_v27, %s4607_s22 }
 0x308   : > { %v1943_v38 = vpop.f32.mrf.mxu3 }
 0x309   : > { %2198 = vrot.lane.b32.xlu0 %v5300_v24, %s4610_s19 }
 0x30a   : > { %v2419_v41 = vpop.f32.mrf.mxu2  ;;  %v2040_v55 = vpop.permute.xlu2 %2039 }
 0x30b   : > { %v5316_v45 = vadd.f32 %v5170_v53, %v2419_v41  ;;  %v1955_v53 = vrot.slane %v5151_v28, 2  ;;  %v2096_v33 = vrot.slane %v2040_v55, 5  ;;  %v6105_v55 = vmov 0.0  }
 0x30c   : > { %v3734_v23 = vpop.f32.mrf.mxu1 }
 0x30d   : > { %2513 = vrot.lane.b32.xlu1 %v5316_v45, %s4607_s22  ;;  %v2036_v4 = vpop.permute.xlu1 %2035  ;;  %v1980_v23 = vsel %vm1968_vm9, %v1955_v53, %v1956_v17  ;;  %v1957_v53 = vrot.slane %v5165_v36, 2 }
 0x30e   : > { %v2094_v13 = vrot.slane %v2036_v4, 5 }
 0x310   : > { %v2737_v3 = vpop.f32.mrf.mxu3  ;;  %v2119_v41 = vsel %vm2107_vm6, %v2094_v13, %v2095_v25 }
 0x312   : > { %v2421_v51 = vpop.f32.mrf.mxu2  ;;  %v2181_v38 = vpop.permute.xlu2 %2180 }
 0x313   : > { %v2142_v51 = vadd.f32 %v2119_v41, %v1980_v23  ;;  %v1958_v41 = vrot.slane %v5181_v40, 2 }
 0x315   : > { %v2177_v3 = vpop.permute.xlu0 %2176 }
 0x316   : > { %v2234_v35 = vadd.f32 %v2177_v3, %v2142_v51  ;;  %v2118_v3 = vsel %vm2107_vm6, %v2095_v25, %v2096_v33 }
 0x318   : > { %v2739_v60 = vpop.f32.mrf.mxu3  ;;  %v2261_v26 = vadd.f32 %v5331_v2, %v2234_v35 }
 0x31a   : > { %v2044_v60 = vpop.permute.xlu2 %2043  ;;  %v2434_v28 = vmul.f32 %v5175_v12, %v2261_v26  ;;  %v1978_v12 = vsel %vm1968_vm9, %v1957_v53, %v1958_v41 }
 0x320   : > { %v2742_v4 = vpop.f32.mrf.mxu3 }
 0x322   : > { %v2185_v51 = vpop.permute.xlu2 %2184 }
 0x326   : > { %v2492_v19 = vpop.permute.xlu1 %2491 }
 0x327   : > { %v2549_v13 = vadd.f32 %v2492_v19, %v2434_v28 }
 0x328   : > { %v2744_v14 = vpop.f32.mrf.mxu3 }
 0x329   : > { %v5338_v23 = vadd.f32 %v2549_v13, %v4849_v21  ;;  %v1979_v21 = vsel %vm1968_vm9, %v1956_v17, %v1957_v53  ;;  %v3226_v17 = vld [vmem:[%s6080_s12] sm:$0xf] }
 0x32a   : > { %v2042_v59 = vpop.permute.xlu0 %2041  ;;  %v2143_v14 = vadd.f32 %v2118_v3, %v1979_v21  ;;  %v3264_v53 = vsel %vm815_vm0, %v3226_v17, 0  ;;  %v6106_v21 = vmov 0.0|0.0  }
 0x32b   : > { %v2097_v62 = vrot.slane %v2042_v59, 5  ;;  %vm2595_vm7 = vcmp.ge.f32.partialorder %v5338_v23, 0.0  ;;  %v2618_v26 = vmul.f32 0.1, %v5338_v23  ;;  %3273 = vmatpush.bf16.msra.mxu0 %v3264_v53 }
 0x32d   : > { %v2117_v36 = vsel %vm2107_vm6, %v2096_v33, %v2097_v62  ;;  %v2641_v59 = vsel %vm2595_vm7, %v5338_v23, %v2618_v26 }
 0x32e   : > { %v2144_v40 = vadd.f32 %v2117_v36, %v1978_v12  ;;  %v2179_v19 = vpop.permute.xlu1 %2178  ;;  %v2681_v25 = vpack.c.bf16 %v2641_v59, %v6105_v55  ;;  %3274 = vmatmul.bf16.vlgmr.msra.gmra.mxu0 %v6106_v21 }
 0x32f   : > { %v2235_v35 = vadd.f32 %v2179_v19, %v2143_v14  ;;  %v1959_v19 = vrot.slane %v5195_v43, 2 }
 0x330   : > { %v2236_v4 = vadd.f32 %v2181_v38, %v2144_v40  ;;  %v2747_v28 = vpop.f32.mrf.mxu3  ;;  %4479 = vmatmul.msk.bf16.gmra.mxu3 %vm1297_vm4, %v2681_v25  ;;  %v2048_v38 = vpop.permute.xlu2 %2047  ;;  %v1960_v25 = vrot.slane %v5208_v54, 2 }
 0x331   : > { %v2262_v13 = vadd.f32 %v5331_v2, %v2235_v35  ;;  %v2098_v35 = vrot.slane %v2044_v60, 5 }
 0x332   : > { %v2494_v63 = vpop.permute.xlu0 %2493  ;;  %v2263_v33 = vadd.f32 %v5331_v2, %v2236_v4  ;;  %v1976_v43 = vsel %vm1968_vm9, %v1959_v19, %v1960_v25 }
 0x333   : > { %v2435_v3 = vmul.f32 %v5193_v0, %v2262_v13 }
 0x334   : > { %v2436_v26 = vmul.f32 %v5202_v30, %v2263_v33 }
 0x335   : > { %v2550_v12 = vadd.f32 %v2494_v63, %v2435_v3 }
 0x336   : > { %v2496_v36 = vpop.permute.xlu1 %2495 }
 0x337   : > { %v5363_v40 = vadd.f32 %v2550_v12, %v4860_v31  ;;  %v2551_v14 = vadd.f32 %v2496_v36, %v2436_v26  ;;  %v2116_v31 = vsel %vm2107_vm6, %v2097_v62, %v2098_v35 }
 0x338   : > { %v2749_v59 = vpop.f32.mrf.mxu3  ;;  %v2189_v3 = vpop.permute.xlu2 %2188 }
 0x339   : > { %v2619_v0 = vmul.f32 0.1, %v5363_v40  ;;  %v5369_v30 = vadd.f32 %v2551_v14, %v4862_v34  ;;  %vm2596_vm8 = vcmp.ge.f32.partialorder %v5363_v40, 0.0  ;;  %v1977_v34 = vsel %vm1968_vm9, %v1958_v41, %v1959_v19 }
 0x33a   : > { %v2046_v4 = vpop.permute.xlu0 %2045  ;;  %v2145_v13 = vadd.f32 %v2116_v31, %v1977_v34  ;;  %v2100_v34 = vrot.slane %v2048_v38, 5 }
 0x33b   : > { %v2099_v63 = vrot.slane %v2046_v4, 5  ;;  %vm2597_vm10 = vcmp.ge.f32.partialorder %v5369_v30, 0.0  ;;  %v2620_v28 = vmul.f32 0.1, %v5369_v30  ;;  %v2642_v33 = vsel %vm2596_vm8, %v5363_v40, %v2619_v0 }
 0x33d   : > { %v2115_v54 = vsel %vm2107_vm6, %v2098_v35, %v2099_v63  ;;  %v2643_v17 = vsel %vm2597_vm10, %v5369_v30, %v2620_v28 }
 0x33e   : > { %v2146_v60 = vadd.f32 %v2115_v54, %v1976_v43  ;;  %v2183_v62 = vpop.permute.xlu1 %2182  ;;  %v2682_v53 = vpack.c.bf16 %v2643_v17, %v2642_v33  ;;  %3279 = vmatmul.bf16.gmra.mxu0 %v6106_v21  ;;  %v1961_v43 = vrot.slane %v5222_v15, 2  ;;  %v1962_v54 = vrot.slane %v5235_v18, 2 }
 0x33f   : > { %v2237_v26 = vadd.f32 %v2183_v62, %v2145_v13 }
 0x340   : > { %v2238_v12 = vadd.f32 %v2185_v51, %v2146_v60  ;;  %v2752_v36 = vpop.f32.mrf.mxu3  ;;  %4480 = vmatmul.msk.bf16.gmra.mxu3 %vm1297_vm4, %v2682_v53  ;;  %v2052_v60 = vpop.permute.xlu2 %2051  ;;  %v1974_v18 = vsel %vm1968_vm9, %v1961_v43, %v1962_v54 }
 0x341   : > { %v2264_v14 = vadd.f32 %v5331_v2, %v2237_v26 }
 0x342   : > { %v2498_v59 = vpop.permute.xlu0 %2497  ;;  %v2265_v35 = vadd.f32 %v5331_v2, %v2238_v12 }
 0x343   : > { %v2437_v41 = vmul.f32 %v5220_v50, %v2264_v14 }
 0x344   : > { %v2438_v19 = vmul.f32 %v5229_v57, %v2265_v35 }
 0x345   : > { %v2552_v0 = vadd.f32 %v2498_v59, %v2437_v41 }
 0x346   : > { %v2500_v4 = vpop.permute.xlu1 %2499 }
 0x347   : > { %v5391_v31 = vadd.f32 %v2552_v0, %v4875_v44  ;;  %v2553_v51 = vadd.f32 %v2500_v4, %v2438_v19  ;;  %v2114_v44 = vsel %vm2107_vm6, %v2099_v63, %v2100_v34 }
 0x348   : > { %v2754_v28 = vpop.f32.mrf.mxu3  ;;  %v2193_v19 = vpop.permute.xlu2 %2192 }
 0x349   : > { %v2621_v13 = vmul.f32 0.1, %v5391_v31  ;;  %v5397_v50 = vadd.f32 %v2553_v51, %v4877_v47  ;;  %vm2598_vm11 = vcmp.ge.f32.partialorder %v5391_v31, 0.0  ;;  %v1975_v47 = vsel %vm1968_vm9, %v1960_v25, %v1961_v43 }
 0x34a   : > { %v2050_v57 = vpop.permute.xlu0 %2049  ;;  %v2147_v62 = vadd.f32 %v2114_v44, %v1975_v47  ;;  %v1963_v43 = vrot.slane %v5248_v52, 2 }
 0x34b   : > { %v2101_v33 = vrot.slane %v2050_v57, 5  ;;  %vm2599_vm12 = vcmp.ge.f32.partialorder %v5397_v50, 0.0  ;;  %v2622_v15 = vmul.f32 0.1, %v5397_v50  ;;  %v2644_v53 = vsel %vm2598_vm11, %v5391_v31, %v2621_v13 }
 0x34c   : > { %v2102_v13 = vrot.slane %v2052_v60, 5 }
 0x34d   : > { %v2113_v38 = vsel %vm2107_vm6, %v2100_v34, %v2101_v33  ;;  %v2645_v26 = vsel %vm2599_vm12, %v5397_v50, %v2622_v15  ;;  %v1964_v34 = vrot.slane %v5261_v8, 2  ;;  %v1973_v8 = vsel %vm1968_vm9, %v1962_v54, %v1963_v43 }
 0x34e   : > { %v2148_v17 = vadd.f32 %v2113_v38, %v1974_v18  ;;  %v2187_v63 = vpop.permute.xlu1 %2186  ;;  %v2683_v12 = vpack.c.bf16 %v2645_v26, %v2644_v53  ;;  %3284 = vmatmul.bf16.gmra.mxu0 %v6106_v21 }
 0x34f   : > { %v2239_v36 = vadd.f32 %v2187_v63, %v2147_v62  ;;  %v1972_v52 = vsel %vm1968_vm9, %v1963_v43, %v1964_v34 }
 0x350   : > { %v2240_v14 = vadd.f32 %v2189_v3, %v2148_v17  ;;  %4481 = vmatmul.msk.bf16.gmra.mxu3 %vm1297_vm4, %v2683_v12  ;;  %v2056_v60 = vpop.permute.xlu2 %2055 }
 0x351   : > { %v2266_v59 = vadd.f32 %v5331_v2, %v2239_v36 }
 0x352   : > { %v2502_v35 = vpop.permute.xlu0 %2501  ;;  %v2267_v41 = vadd.f32 %v5331_v2, %v2240_v14 }
 0x353   : > { %v2439_v25 = vmul.f32 %v5246_v1, %v2266_v59 }
 0x354   : > { %v2440_v0 = vmul.f32 %v5255_v6, %v2267_v41  ;;  %v2112_v6 = vsel %vm2107_vm6, %v2101_v33, %v2102_v13 }
 0x355   : > { %v2554_v4 = vadd.f32 %v2502_v35, %v2439_v25  ;;  %v2149_v18 = vadd.f32 %v2112_v6, %v1973_v8 }
 0x357   : > { %v2504_v51 = vpop.permute.xlu1 %2503  ;;  %v5419_v28 = vadd.f32 %v2554_v4, %v4887_v56  ;;  %v1966_v4 = vrot.slane %v5287_v29, 2 }
 0x358   : > { %v2555_v3 = vadd.f32 %v2504_v51, %v2440_v0  ;;  %v2197_v41 = vpop.permute.xlu2 %2196  ;;  %v2104_v51 = vrot.slane %v2056_v60, 5 }
 0x359   : > { %v2623_v57 = vmul.f32 0.1, %v5419_v28  ;;  %vm2600_vm13 = vcmp.ge.f32.partialorder %v5419_v28, 0.0 }
 0x35a   : > { %v5425_v44 = vadd.f32 %v2555_v3, %v4889_v58 }
 0x35b   : > { %v2054_v1 = vpop.permute.xlu0 %2053  ;;  %v2646_v38 = vsel %vm2600_vm13, %v5419_v28, %v2623_v57 }
 0x35c   : > { %vm2601_vm14 = vcmp.ge.f32.partialorder %v5425_v44, 0.0  ;;  %v2624_v56 = vmul.f32 0.1, %v5425_v44  ;;  %v2103_v15 = vrot.slane %v2054_v1, 5 }
 0x35e   : > { %v2111_v58 = vsel %vm2107_vm6, %v2102_v13, %v2103_v15  ;;  %v2647_v33 = vsel %vm2601_vm14, %v5425_v44, %v2624_v56  ;;  %3289 = vmatmul.bf16.gmra.mxu0 %v6106_v21  ;;  %v2110_v43 = vsel %vm2107_vm6, %v2103_v15, %v2104_v51 }
 0x35f   : > { %v2150_v47 = vadd.f32 %v2111_v58, %v1972_v52  ;;  %v2191_v17 = vpop.permute.xlu1 %2190  ;;  %v2684_v62 = vpack.c.bf16 %v2647_v33, %v2646_v38  ;;  %v2757_v58 = vpop.f32.mrf.mxu3 }
 0x360   : > { %v2241_v53 = vadd.f32 %v2191_v17, %v2149_v18  ;;  %v2060_v18 = vpop.permute.xlu2 %2059  ;;  %v1967_v17 = vrot.slane %v5300_v24, 2 }
 0x361   : > { %4482 = vmatmul.msk.bf16.gmra.mxu3 %vm1297_vm4, %v2684_v62  ;;  %v2242_v26 = vadd.f32 %v2193_v19, %v2150_v47  ;;  %v1965_v19 = vrot.slane %v5274_v11, 2  ;;  %v2106_v62 = vrot.slane %v2060_v18, 5 }
 0x362   : > { %v2268_v63 = vadd.f32 %v5331_v2, %v2241_v53 }
 0x363   : > { %v2506_v12 = vpop.permute.xlu0 %2505  ;;  %v2269_v54 = vadd.f32 %v5331_v2, %v2242_v26  ;;  %v1970_v11 = vsel %vm1968_vm9, %v1965_v19, %v1966_v4  ;;  %v1971_v29 = vsel %vm1968_vm9, %v1964_v34, %v1965_v19 }
 0x364   : > { %v2441_v36 = vmul.f32 %v5272_v10, %v2268_v63  ;;  %v2151_v57 = vadd.f32 %v2110_v43, %v1971_v29 }
 0x365   : > { %v2442_v14 = vmul.f32 %v5281_v9, %v2269_v54 }
 0x366   : > { %v2556_v59 = vadd.f32 %v2506_v12, %v2441_v36 }
 0x367   : > { %v2508_v35 = vpop.permute.xlu1 %2507 }
 0x368   : > { %v5447_v25 = vadd.f32 %v2556_v59, %v4900_v5  ;;  %v2557_v0 = vadd.f32 %v2508_v35, %v2442_v14  ;;  %v1969_v14 = vsel %vm1968_vm9, %v1966_v4, %v1967_v17 }
 0x36a   : > { %v2625_v3 = vmul.f32 0.1, %v5447_v25  ;;  %v5453_v10 = vadd.f32 %v2557_v0, %v4902_v7  ;;  %vm2602_vm15 = vcmp.ge.f32.partialorder %v5447_v25, 0.0 }
 0x36b   : > { %v2058_v9 = vpop.permute.xlu0 %2057 }
 0x36c   : > { %vm2603_vm1 = vcmp.ge.f32.partialorder %v5453_v10, 0.0  ;;  %v2626_v5 = vmul.f32 0.1, %v5453_v10  ;;  %v2105_v13 = vrot.slane %v2058_v9, 5  ;;  %v2648_v1 = vsel %vm2602_vm15, %v5447_v25, %v2625_v3 }
 0x36e   : > { %v2109_v7 = vsel %vm2107_vm6, %v2104_v51, %v2105_v13  ;;  %v2649_v6 = vsel %vm2603_vm1, %v5453_v10, %v2626_v5  ;;  %v2108_v12 = vsel %vm2107_vm6, %v2105_v13, %v2106_v62  ;;  %3294 = vmatmul.bf16.gmra.mxu0 %v6106_v21  ;;  %v2804_v5 = vrot.slane %v2757_v58, 6 }
 0x36f   : > { %v2152_v56 = vadd.f32 %v2109_v7, %v1970_v11  ;;  %v2195_v15 = vpop.permute.xlu1 %2194  ;;  %v2685_v52 = vpack.c.bf16 %v2649_v6, %v2648_v1 }
 0x370   : > { %v2243_v8 = vadd.f32 %v2195_v15, %v2151_v57 }
 0x371   : > { %4483 = vmatmul.msk.bf16.gmra.mxu3 %vm1297_vm4, %v2685_v52  ;;  %v2244_v60 = vadd.f32 %v2197_v41, %v2152_v56 }
 0x372   : > { %v2270_v38 = vadd.f32 %v5331_v2, %v2243_v8 }
 0x373   : > { %v2510_v34 = vpop.permute.xlu0 %2509  ;;  %v2271_v33 = vadd.f32 %v5331_v2, %v2244_v60 }
 0x374   : > { %v2443_v47 = vmul.f32 %v5298_v22, %v2270_v38  ;;  %v2759_v22 = vpop.f32.mrf.mxu3 }
 0x375   : > { %v2444_v53 = vmul.f32 %v5307_v27, %v2271_v33  ;;  %v2153_v27 = vadd.f32 %v2108_v12, %v1969_v14  ;;  %2883 = vrot.lane.b32.xlu2 %v2759_v22, %s4607_s22  ;;  %v2805_v13 = vrot.slane %v2759_v22, 6 }
 0x376   : > { %v2558_v26 = vadd.f32 %v2510_v34, %v2443_v47 }
 0x377   : > { %v2512_v63 = vpop.permute.xlu1 %2511 }
 0x378   : > { %v5478_v54 = vadd.f32 %v2558_v26, %v4913_v16  ;;  %v2559_v36 = vadd.f32 %v2512_v63, %v2444_v53 }
 0x37a   : > { %v2627_v24 = vmul.f32 0.1, %v5478_v54  ;;  %v5484_v59 = vadd.f32 %v2559_v36, %v4915_v20  ;;  %vm2604_vm5 = vcmp.ge.f32.partialorder %v5478_v54, 0.0 }
 0x37b   : > { %v2199_v35 = vpop.permute.xlu0 %2198 }
 0x37c   : > { %vm2605_vm7 = vcmp.ge.f32.partialorder %v5484_v59, 0.0  ;;  %v2628_v16 = vmul.f32 0.1, %v5484_v59  ;;  %v2245_v41 = vadd.f32 %v2199_v35, %v2153_v27  ;;  %v2650_v19 = vsel %vm2604_vm5, %v5478_v54, %v2627_v24 }
 0x37e   : > { %v2272_v0 = vadd.f32 %v5331_v2, %v2245_v41  ;;  %v2651_v4 = vsel %vm2605_vm7, %v5484_v59, %v2628_v16  ;;  %v5501_v2 = vsel %vm1428_vm3, %v2804_v5, %v2805_v13 }
 0x37f   : > { %v2686_v51 = vpack.c.bf16 %v2651_v4, %v2650_v19  ;;  %v2514_v3 = vpop.permute.xlu1 %2513 }
 0x380   : > { %v2445_v20 = vmul.f32 %v5316_v45, %v2272_v0 }
 0x381   : > { %4484 = vmatmul.msk.bf16.gmra.mxu3 %vm1297_vm4, %v2686_v51 }
 0x382   : > { %v2560_v9 = vadd.f32 %v2514_v3, %v2445_v20 }
 0x384   : > { %v5496_v43 = vadd.f32 %v2560_v9, %v4931_v37 }
 0x386   : > { %v2629_v11 = vmul.f32 0.1, %v5496_v43  ;;  %vm2606_vm8 = vcmp.ge.f32.partialorder %v5496_v43, 0.0 }
 0x388   : > { %v2652_v29 = vsel %vm2606_vm8, %v5496_v43, %v2629_v11 }
 0x389   : > { %v2687_v45 = vpack.c.bf16 %v2652_v29, %v2652_v29 }
 0x391   : > { %4485 = vmatmul.msk.bf16.gmra.mxu3 %vm1297_vm4, %v2687_v45  ;;  %v3932_v45 = vld [vmem:[%s6084_s16] sm:$0xf] }
 0x3ab   : > { %v3275_v57 = vpop.f32.mrf.mxu0 }
 0x3b3   : > { %v2762_v7 = vpop.f32.mrf.mxu3  ;;  %v3277_v56 = vpop.f32.mrf.mxu0 }
 0x3b4   : > { %v2806_v1 = vrot.slane %v2762_v7, 6  ;;  %2885 = vrot.lane.b32.xlu0 %v2762_v7, %s4607_s22  ;;  %v3970_v7 = vsel %vm815_vm0, %v3932_v45, 0  ;;  %v5596_v56 = vld [vmem:[%s6083_s15] ss:$0 sm:$0xff] }
 0x3b5   : > { %3979 = vmatpush.bf16.msra.mxu2 %v3970_v7 }
 0x3b6   : > { %v5509_v37 = vsel %vm1428_vm3, %v2805_v13, %v2806_v1 }
 0x3b8   : > { %3980 = vmatmul.bf16.vlgmr.msra.gmra.mxu2 %v6106_v21 }
 0x3bb   : > { %v2764_v6 = vpop.f32.mrf.mxu3  ;;  %v3280_v60 = vpop.f32.mrf.mxu0 }
 0x3bc   : > { %v2807_v15 = vrot.slane %v2764_v6, 6  ;;  %2887 = vrot.lane.b32.xlu2 %v2764_v6, %s4607_s22  ;;  %3025 = vrot.lane.b32.xlu1 %v2764_v6, %s4610_s19 }
 0x3be   : > { %v5515_v52 = vsel %vm1428_vm3, %v2806_v1, %v2807_v15 }
 0x3c3   : > { %v2767_v8 = vpop.f32.mrf.mxu3  ;;  %v3282_v34 = vpop.f32.mrf.mxu0 }
 0x3c4   : > { %v2808_v58 = vrot.slane %v2767_v8, 6  ;;  %3027 = vrot.lane.b32.xlu1 %v2767_v8, %s4610_s19  ;;  %2889 = vrot.lane.b32.xlu0 %v2767_v8, %s4607_s22  ;;  %v5602_v8 = vadd.f32 %v5596_v56, %v5162_v32  ;;  %v5614_v32 = vld [vmem:[%s6079_s11] ss:$0 sm:$0xff] }
 0x3c6   : > { %v5521_v18 = vsel %vm1428_vm3, %v2807_v15, %v2808_v58 }
 0x3c8   : > { %3983 = vmatmul.bf16.gmra.mxu2 %v6106_v21 }
 0x3cb   : > { %v2769_v38 = vpop.f32.mrf.mxu3  ;;  %v5547_v24 = vpop.f32.mrf.mxu0 }
 0x3cc   : > { %v2809_v33 = vrot.slane %v2769_v38, 6  ;;  %2891 = vrot.lane.b32.xlu0 %v2769_v38, %s4607_s22  ;;  %3029 = vrot.lane.b32.xlu2 %v2769_v38, %s4610_s19 }
 0x3ce   : > { %v5527_v47 = vsel %vm1428_vm3, %v2808_v58, %v2809_v33 }
 0x3cf   : > { %v2884_v58 = vpop.permute.xlu2 %2883 }
 0x3d3   : > { %v2772_v17 = vpop.f32.mrf.mxu3  ;;  %v5555_v41 = vpop.f32.mrf.mxu0 }
 0x3d4   : > { %v2810_v62 = vrot.slane %v2772_v17, 6  ;;  %3031 = vrot.lane.b32.xlu2 %v2772_v17, %s4610_s19  ;;  %2893 = vrot.lane.b32.xlu1 %v2772_v17, %s4607_s22 }
 0x3d6   : > { %v5533_v53 = vsel %vm1428_vm3, %v2809_v33, %v2810_v62  ;;  %v2943_v33 = vrot.slane %v2884_v58, 7 }
 0x3d8   : > { %3986 = vmatmul.bf16.gmra.mxu2 %v6106_v21 }
 0x3db   : > { %v2774_v26 = vpop.f32.mrf.mxu3  ;;  %v5563_v20 = vpop.f32.mrf.mxu0 }
 0x3dc   : > { %v2811_v63 = vrot.slane %v2774_v26, 6  ;;  %2895 = vrot.lane.b32.xlu1 %v2774_v26, %s4607_s22  ;;  %3033 = vrot.lane.b32.xlu0 %v2774_v26, %s4610_s19 }
 0x3de   : > { %v5539_v12 = vsel %vm1428_vm3, %v2810_v62, %v2811_v63 }
 0x3e3   : > { %v5573_v11 = vpop.f32.mrf.mxu0 }
 0x3e4   : > { %v2777_v36 = vpop.f32.mrf.mxu3 }
 0x3e5   : > { %v2812_v14 = vrot.slane %v2777_v36, 6  ;;  %3035 = vrot.lane.b32.xlu0 %v2777_v36, %s4610_s19  ;;  %2897 = vrot.lane.b32.xlu2 %v2777_v36, %s4607_s22 }
 0x3e7   : > { %v5545_v22 = vsel %vm1428_vm3, %v2811_v63, %v2812_v14 }
 0x3e8   : > { %3989 = vmatmul.bf16.gmra.mxu2 %v6106_v21 }
 0x3eb   : > { %v5586_v1 = vpop.f32.mrf.mxu0 }
 0x3ec   : > { %v2779_v27 = vpop.f32.mrf.mxu3 }
 0x3ed   : > { %v2813_v35 = vrot.slane %v2779_v27, 6  ;;  %2899 = vrot.lane.b32.xlu2 %v2779_v27, %s4607_s22  ;;  %3037 = vrot.lane.b32.xlu1 %v2779_v27, %s4610_s19 }
 0x3ef   : > { %v5553_v16 = vsel %vm1428_vm3, %v2812_v14, %v2813_v35 }
 0x3f3   : > { %v5598_v15 = vpop.f32.mrf.mxu0 }
 0x3f4   : > { %v2782_v0 = vpop.f32.mrf.mxu3 }
 0x3f5   : > { %v2814_v19 = vrot.slane %v2782_v0, 6  ;;  %3039 = vrot.lane.b32.xlu1 %v2782_v0, %s4610_s19  ;;  %2901 = vrot.lane.b32.xlu0 %v2782_v0, %s4607_s22 }
 0x3f7   : > { %v5561_v4 = vsel %vm1428_vm3, %v2813_v35, %v2814_v19 }
 0x3f8   : > { %3992 = vmatmul.bf16.gmra.mxu2 %v6106_v21 }
 0x3fc   : > { %v2784_v51 = vpop.f32.mrf.mxu3 }
 0x3fd   : > { %v2815_v3 = vrot.slane %v2784_v51, 6  ;;  %2903 = vrot.lane.b32.xlu0 %v2784_v51, %s4607_s22  ;;  %3041 = vrot.lane.b32.xlu2 %v2784_v51, %s4610_s19 }
 0x3ff   : > { %v5569_v9 = vsel %vm1428_vm3, %v2814_v19, %v2815_v3 }
 0x404   : > { %v2787_v5 = vpop.f32.mrf.mxu3 }
 0x405   : > { %v2816_v13 = vrot.slane %v2787_v5, 6  ;;  %3043 = vrot.lane.b32.xlu2 %v2787_v5, %s4610_s19  ;;  %2905 = vrot.lane.b32.xlu1 %v2787_v5, %s4607_s22 }
 0x407   : > { %v5577_v29 = vsel %vm1428_vm3, %v2815_v3, %v2816_v13 }
 0x40c   : > { %v2789_v57 = vpop.f32.mrf.mxu3 }
 0x40d   : > { %2907 = vrot.lane.b32.xlu1 %v2789_v57, %s4607_s22  ;;  %3045 = vrot.lane.b32.xlu0 %v2789_v57, %s4610_s19 }
 0x414   : > { %v2792_v6 = vpop.f32.mrf.mxu3 }
 0x415   : > { %3419 = vrot.lane.b32.xlu1 %v5586_v1, %s4607_s22  ;;  %3417 = vrot.lane.b32.xlu0 %v5573_v11, %s4607_s22 }
 0x416   : > { %3047 = vrot.lane.b32.xlu2 %v2792_v6, %s4610_s19  ;;  %v2888_v62 = vpop.permute.xlu2 %2887 }
 0x417   : > { %v2945_v14 = vrot.slane %v2888_v62, 7 }
 0x41c   : > { %v2794_v60 = vpop.f32.mrf.mxu3 }
 0x41d   : > { %3421 = vrot.lane.b32.xlu1 %v5598_v15, %s4607_s22  ;;  %3804 = vrot.lane.b32.xlu0 %v5602_v8, %s4607_s22 }
 0x426   : > { %v2886_v38 = vpop.permute.xlu0 %2885  ;;  %v3030_v60 = vpop.permute.xlu2 %3029 }
 0x427   : > { %v2944_v34 = vrot.slane %v2886_v38, 7 }
 0x429   : > { %v2969_v17 = vsel %vm1567_vm2, %v2943_v33, %v2944_v34  ;;  %v2968_v35 = vsel %vm1567_vm2, %v2944_v34, %v2945_v14 }
 0x42a   : > { %v2991_v26 = vadd.f32 %v2969_v17, %v5501_v2  ;;  %v2992_v51 = vadd.f32 %v2968_v35, %v5509_v37 }
 0x42e   : > { %v3026_v63 = vpop.permute.xlu1 %3025  ;;  %v3032_v35 = vpop.permute.xlu2 %3031 }
 0x42f   : > { %v3083_v36 = vadd.f32 %v3026_v63, %v2991_v26 }
 0x431   : > { %v3110_v27 = vadd.f32 %v5614_v32, %v3083_v36 }
 0x433   : > { %vm3133_vm0 = vcmp.ge.f32.partialorder %v3110_v27, 0.0  ;;  %v3156_v0 = vmul.f32 0.1, %v3110_v27 }
 0x435   : > { %v3179_v19 = vsel %vm3133_vm0, %v3110_v27, %v3156_v0 }
 0x436   : > { %v3028_v3 = vpop.permute.xlu1 %3027  ;;  %v2890_v5 = vpop.permute.xlu0 %2889  ;;  %v3219_v13 = vpack.c.bf16 %v3179_v19, %v6105_v55 }
 0x437   : > { %v3084_v2 = vadd.f32 %v3028_v3, %v2992_v51  ;;  %v2946_v45 = vrot.slane %v2890_v5, 7 }
 0x438   : > { %4486 = vmatmul.msk.bf16.gmra.mxu0 %vm1297_vm4, %v3219_v13 }
 0x439   : > { %v2967_v7 = vsel %vm1567_vm2, %v2945_v14, %v2946_v45  ;;  %v3111_v57 = vadd.f32 %v5614_v32, %v3084_v2 }
 0x43a   : > { %v2993_v6 = vadd.f32 %v2967_v7, %v5515_v52 }
 0x43b   : > { %v3157_v37 = vmul.f32 0.1, %v3111_v57  ;;  %vm3134_vm10 = vcmp.ge.f32.partialorder %v3111_v57, 0.0 }
 0x43c   : > { %v3085_v58 = vadd.f32 %v3030_v60, %v2993_v6 }
 0x43d   : > { %v3180_v62 = vsel %vm3134_vm10, %v3111_v57, %v3157_v37 }
 0x43e   : > { %v3112_v38 = vadd.f32 %v5614_v32, %v3085_v58  ;;  %v2892_v34 = vpop.permute.xlu0 %2891 }
 0x43f   : > { %v2947_v33 = vrot.slane %v2892_v34, 7 }
 0x440   : > { %vm3135_vm11 = vcmp.ge.f32.partialorder %v3112_v38, 0.0  ;;  %v3158_v17 = vmul.f32 0.1, %v3112_v38 }
 0x441   : > { %v2966_v26 = vsel %vm1567_vm2, %v2946_v45, %v2947_v33 }
 0x442   : > { %v3181_v63 = vsel %vm3135_vm11, %v3112_v38, %v3158_v17  ;;  %v2994_v52 = vadd.f32 %v2966_v26, %v5521_v18  ;;  %v2898_v18 = vpop.permute.xlu2 %2897 }
 0x443   : > { %v3220_v36 = vpack.c.bf16 %v3181_v63, %v3180_v62  ;;  %v2950_v34 = vrot.slane %v2898_v18, 7 }
 0x444   : > { %v3086_v0 = vadd.f32 %v3032_v35, %v2994_v52 }
 0x446   : > { %v2894_v14 = vpop.permute.xlu1 %2893  ;;  %v3113_v51 = vadd.f32 %v5614_v32, %v3086_v0 }
 0x447   : > { %v2948_v27 = vrot.slane %v2894_v14, 7 }
 0x448   : > { %4487 = vmatmul.msk.bf16.gmra.mxu0 %vm1297_vm4, %v3220_v36  ;;  %v3159_v57 = vmul.f32 0.1, %v3113_v51  ;;  %vm3136_vm12 = vcmp.ge.f32.partialorder %v3113_v51, 0.0 }
 0x449   : > { %v2965_v19 = vsel %vm1567_vm2, %v2947_v33, %v2948_v27 }
 0x44a   : > { %v2995_v3 = vadd.f32 %v2965_v19, %v5527_v47  ;;  %v3182_v37 = vsel %vm3136_vm12, %v3113_v51, %v3159_v57  ;;  %v2900_v62 = vpop.permute.xlu2 %2899  ;;  %v3338_v19 = vrot.slane %v5547_v24, 2  ;;  %v3339_v51 = vrot.slane %v5555_v41, 2 }
 0x44b   : > { %v2951_v36 = vrot.slane %v2900_v62, 7 }
 0x44c   : > { %v5660_v24 = vsel %vm1968_vm9, %v3338_v19, %v3339_v51 }
 0x44e   : > { %v2896_v5 = vpop.permute.xlu1 %2895  ;;  %v3034_v13 = vpop.permute.xlu0 %3033 }
 0x44f   : > { %v3087_v2 = vadd.f32 %v3034_v13, %v2995_v3  ;;  %v2949_v45 = vrot.slane %v2896_v5, 7  ;;  %v3340_v3 = vrot.slane %v5563_v20, 2 }
 0x451   : > { %v3114_v7 = vadd.f32 %v5614_v32, %v3087_v2  ;;  %v2964_v60 = vsel %vm1567_vm2, %v2948_v27, %v2949_v45  ;;  %v2963_v17 = vsel %vm1567_vm2, %v2949_v45, %v2950_v34  ;;  %v5664_v41 = vsel %vm1968_vm9, %v3339_v51, %v3340_v3 }
 0x452   : > { %v2996_v21 = vadd.f32 %v2964_v60, %v5533_v53  ;;  %v2997_v63 = vadd.f32 %v2963_v17, %v5539_v12  ;;  %v2962_v53 = vsel %vm1567_vm2, %v2950_v34, %v2951_v36 }
 0x453   : > { %vm3137_vm13 = vcmp.ge.f32.partialorder %v3114_v7, 0.0  ;;  %v3160_v6 = vmul.f32 0.1, %v3114_v7  ;;  %v2998_v13 = vadd.f32 %v2962_v53, %v5545_v22 }
 0x455   : > { %v3183_v58 = vsel %vm3137_vm13, %v3114_v7, %v3160_v6 }
 0x456   : > { %v3221_v47 = vpack.c.bf16 %v3183_v58, %v3182_v37 }
 0x457   : > { %v3036_v38 = vpop.permute.xlu0 %3035  ;;  %v3042_v60 = vpop.permute.xlu2 %3041 }
 0x458   : > { %4488 = vmatmul.msk.bf16.gmra.mxu0 %vm1297_vm4, %v3221_v47  ;;  %v3088_v33 = vadd.f32 %v3036_v38, %v2996_v21 }
 0x45a   : > { %v3115_v26 = vadd.f32 %v5614_v32, %v3088_v33 }
 0x45c   : > { %v3161_v27 = vmul.f32 0.1, %v3115_v26  ;;  %vm3138_vm14 = vcmp.ge.f32.partialorder %v3115_v26, 0.0 }
 0x45e   : > { %v3184_v5 = vsel %vm3138_vm14, %v3115_v26, %v3161_v27 }
 0x45f   : > { %v3038_v52 = vpop.permute.xlu1 %3037  ;;  %v3044_v27 = vpop.permute.xlu2 %3043 }
 0x460   : > { %v3089_v14 = vadd.f32 %v3038_v52, %v2997_v63  ;;  %v3341_v63 = vrot.slane %v5573_v11, 2 }
 0x462   : > { %v3116_v35 = vadd.f32 %v5614_v32, %v3089_v14  ;;  %v5677_v53 = vsel %vm1968_vm9, %v3340_v3, %v3341_v63 }
 0x464   : > { %vm3139_vm15 = vcmp.ge.f32.partialorder %v3116_v35, 0.0  ;;  %v3162_v0 = vmul.f32 0.1, %v3116_v35 }
 0x466   : > { %v3185_v12 = vsel %vm3139_vm15, %v3116_v35, %v3162_v0 }
 0x467   : > { %v3040_v2 = vpop.permute.xlu1 %3039  ;;  %v2902_v45 = vpop.permute.xlu0 %2901  ;;  %v3222_v18 = vpack.c.bf16 %v3185_v12, %v3184_v5 }
 0x468   : > { %v3090_v7 = vadd.f32 %v3040_v2, %v2998_v13  ;;  %v2952_v57 = vrot.slane %v2902_v45, 7 }
 0x469   : > { %4489 = vmatmul.msk.bf16.gmra.mxu0 %vm1297_vm4, %v3222_v18 }
 0x46a   : > { %v2961_v6 = vsel %vm1567_vm2, %v2951_v36, %v2952_v57  ;;  %v3117_v22 = vadd.f32 %v5614_v32, %v3090_v7 }
 0x46b   : > { %v2999_v20 = vadd.f32 %v2961_v6, %v5553_v16  ;;  %v3342_v16 = vrot.slane %v5586_v1, 2 }
 0x46c   : > { %v3163_v37 = vmul.f32 0.1, %v3117_v22  ;;  %vm3140_vm1 = vcmp.ge.f32.partialorder %v3117_v22, 0.0 }
 0x46d   : > { %v3091_v58 = vadd.f32 %v3042_v60, %v2999_v20  ;;  %v5683_v0 = vsel %vm1968_vm9, %v3341_v63, %v3342_v16 }
 0x46e   : > { %v3186_v33 = vsel %vm3140_vm1, %v3117_v22, %v3163_v37  ;;  %v3981_v37 = vpop.f32.mrf.mxu2 }
 0x46f   : > { %v3118_v38 = vadd.f32 %v5614_v32, %v3091_v58  ;;  %v2904_v47 = vpop.permute.xlu0 %2903 }
 0x470   : > { %v2953_v21 = vrot.slane %v2904_v47, 7  ;;  %v3048_v22 = vpop.permute.xlu2 %3047 }
 0x471   : > { %vm3141_vm5 = vcmp.ge.f32.partialorder %v3118_v38, 0.0  ;;  %v3164_v34 = vmul.f32 0.1, %v3118_v38 }
 0x472   : > { %v2960_v17 = vsel %vm1567_vm2, %v2952_v57, %v2953_v21 }
 0x473   : > { %v3187_v62 = vsel %vm3141_vm5, %v3118_v38, %v3164_v34  ;;  %v3000_v36 = vadd.f32 %v2960_v17, %v5561_v4 }
 0x474   : > { %v3223_v26 = vpack.c.bf16 %v3187_v62, %v3186_v33 }
 0x475   : > { %v3092_v35 = vadd.f32 %v3044_v27, %v3000_v36 }
 0x477   : > { %v2906_v52 = vpop.permute.xlu1 %2905  ;;  %v3119_v4 = vadd.f32 %v5614_v32, %v3092_v35 }
 0x478   : > { %v2954_v14 = vrot.slane %v2906_v52, 7 }
 0x479   : > { %4490 = vmatmul.msk.bf16.gmra.mxu0 %vm1297_vm4, %v3223_v26  ;;  %v3165_v45 = vmul.f32 0.1, %v3119_v4  ;;  %vm3142_vm7 = vcmp.ge.f32.partialorder %v3119_v4, 0.0 }
 0x47a   : > { %v2959_v11 = vsel %vm1567_vm2, %v2953_v21, %v2954_v14  ;;  %v3982_v21 = vpop.f32.mrf.mxu2 }
 0x47b   : > { %v3001_v19 = vadd.f32 %v2959_v11, %v5569_v9  ;;  %v3188_v6 = vsel %vm3142_vm7, %v3119_v4, %v3165_v45  ;;  %v5715_v4 = vadd.f32 %v5596_v56, %v5177_v39  ;;  %v5739_v45 = vadd.f32 %v5596_v56, %v5204_v48 }
 0x47f   : > { %v2908_v51 = vpop.permute.xlu1 %2907  ;;  %v3046_v5 = vpop.permute.xlu0 %3045 }
 0x480   : > { %v2955_v12 = vrot.slane %v2908_v51, 7  ;;  %v3093_v13 = vadd.f32 %v3046_v5, %v3001_v19  ;;  %v5719_v19 = vadd.f32 %v5596_v56, %v5187_v42 }
 0x482   : > { %v2958_v3 = vsel %vm1567_vm2, %v2954_v14, %v2955_v12  ;;  %v3120_v2 = vadd.f32 %v5614_v32, %v3093_v13 }
 0x483   : > { %v3002_v18 = vadd.f32 %v2958_v3, %v5577_v29  ;;  %v3984_v29 = vpop.f32.mrf.mxu2 }
 0x484   : > { %vm3143_vm8 = vcmp.ge.f32.partialorder %v3120_v2, 0.0  ;;  %v3166_v7 = vmul.f32 0.1, %v3120_v2 }
 0x485   : > { %v3094_v9 = vadd.f32 %v3048_v22, %v3002_v18  ;;  %v5743_v18 = vadd.f32 %v5596_v56, %v5214_v49 }
 0x486   : > { %v3189_v57 = vsel %vm3143_vm8, %v3120_v2, %v3166_v7 }
 0x487   : > { %v3224_v20 = vpack.c.bf16 %v3189_v57, %v3188_v6  ;;  %v3121_v60 = vadd.f32 %v5614_v32, %v3094_v9  ;;  %v6107_v9 = vld [vmem:[#allocation3_spill] sm:$0xff] }
 0x489   : > { %4491 = vmatmul.msk.bf16.gmra.mxu0 %vm1297_vm4, %v3224_v20  ;;  %v3167_v58 = vmul.f32 0.1, %v3121_v60  ;;  %vm3144_vm0 = vcmp.ge.f32.partialorder %v3121_v60, 0.0  ;;  %v5763_v20 = vadd.f32 %v5596_v56, %v5231_v61  ;;  %v6108_v61 = vld [vmem:[#allocation4_spill] sm:$0xff] }
 0x48b   : > { %v3190_v38 = vsel %vm3144_vm0, %v3121_v60, %v3167_v58  ;;  %v3985_v34 = vpop.f32.mrf.mxu2  ;;  %v5767_v60 = vadd.f32 %v5596_v56, %v6107_v9 }
 0x48c   : > { %v3225_v47 = vpack.c.bf16 %v3190_v38, %v3190_v38  ;;  %v5779_v38 = vadd.f32 %v5596_v56, %v6108_v61 }
 0x493   : > { %v3987_v33 = vpop.f32.mrf.mxu2 }
 0x494   : > { %v6110_v33 = vld [vmem:[#allocation6_spill] sm:$0xff] }
 0x499   : > { %4492 = vmatmul.msk.bf16.gmra.mxu0 %vm1297_vm4, %v3225_v47  ;;  %v6109_v47 = vld [vmem:[#allocation5_spill] sm:$0xff] }
 0x49a   : > { %v5783_v21 = vadd.f32 %v5596_v56, %v6109_v47 }
 0x49b   : > { %v3988_v62 = vpop.f32.mrf.mxu2 }
 0x49c   : > { %v5795_v62 = vadd.f32 %v5596_v56, %v6110_v33 }
 0x4a3   : > { %v3990_v52 = vpop.f32.mrf.mxu2 }
 0x4a4   : > { %v3420_v52 = vpop.permute.xlu1 %3419 }
 0x4ab   : > { %v3991_v11 = vpop.f32.mrf.mxu2 }
 0x4ac   : > { %v3480_v11 = vrot.slane %v3420_v52, 5 }
 0x4b3   : > { %v3993_v39 = vpop.f32.mrf.mxu2 }
 0x4b5   : > { %v5696_v17 = vpop.f32.mrf.mxu0 }
 0x4b6   : > { %v3344_v63 = vrot.slane %v5696_v17, 2 }
 0x4bb   : > { %v3994_v2 = vpop.f32.mrf.mxu2 }
 0x4bc   : > { %v5819_v2 = vld [vmem:[%s6081_s13] ss:$0 sm:$0xff] }
 0x4bd   : > { %v3302_v26 = vpop.f32.mrf.mxu0 }
 0x4be   : > { %v3345_v36 = vrot.slane %v3302_v26, 2  ;;  %3563 = vrot.lane.b32.xlu2 %v3302_v26, %s4610_s19 }
 0x4c0   : > { %v5704_v32 = vsel %vm1968_vm9, %v3344_v63, %v3345_v36 }
 0x4c5   : > { %v3305_v14 = vpop.f32.mrf.mxu0 }
 0x4c6   : > { %v3346_v27 = vrot.slane %v3305_v14, 2  ;;  %3423 = vrot.lane.b32.xlu2 %v5696_v17, %s4607_s22  ;;  %3565 = vrot.lane.b32.xlu0 %v3305_v14, %s4610_s19 }
 0x4c8   : > { %v5711_v35 = vsel %vm1968_vm9, %v3345_v36, %v3346_v27 }
 0x4cd   : > { %v3307_v51 = vpop.f32.mrf.mxu0 }
 0x4ce   : > { %v3347_v5 = vrot.slane %v3307_v51, 2  ;;  %3806 = vrot.lane.b32.xlu2 %v5715_v4, %s4607_s22  ;;  %3808 = vrot.lane.b32.xlu0 %v5719_v19, %s4607_s22 }
 0x4cf   : > { %3567 = vrot.lane.b32.xlu1 %v3307_v51, %s4610_s19 }
 0x4d0   : > { %v5728_v12 = vsel %vm1968_vm9, %v3346_v27, %v3347_v5 }
 0x4d5   : > { %v3310_v13 = vpop.f32.mrf.mxu0 }
 0x4d6   : > { %v3348_v3 = vrot.slane %v3310_v13, 2  ;;  %3427 = vrot.lane.b32.xlu2 %v3305_v14, %s4607_s22  ;;  %3569 = vrot.lane.b32.xlu0 %v3310_v13, %s4610_s19  ;;  %v3418_v14 = vpop.permute.xlu0 %3417 }
 0x4d7   : > { %3425 = vrot.lane.b32.xlu1 %v3302_v26, %s4607_s22  ;;  %v6111_v26 = vld [vmem:[#allocation7_spill] sm:$0xff] }
 0x4d8   : > { %v5735_v42 = vsel %vm1968_vm9, %v3347_v5, %v3348_v3  ;;  %v5799_v36 = vadd.f32 %v5596_v56, %v6111_v26  ;;  %v6112_v5 = vld [vmem:[#allocation8_spill] sm:$0xff] }
 0x4d9   : > { %v5808_v39 = vadd.f32 %v5596_v56, %v6112_v5 }
 0x4dd   : > { %v3312_v7 = vpop.f32.mrf.mxu0 }
 0x4de   : > { %v3349_v57 = vrot.slane %v3312_v7, 2  ;;  %3810 = vrot.lane.b32.xlu2 %v5739_v45, %s4607_s22  ;;  %3812 = vrot.lane.b32.xlu0 %v5743_v18, %s4607_s22 }
 0x4df   : > { %3571 = vrot.lane.b32.xlu1 %v3312_v7, %s4610_s19 }
 0x4e0   : > { %v5752_v6 = vsel %vm1968_vm9, %v3348_v3, %v3349_v57 }
 0x4e6   : > { %v3315_v48 = vpop.f32.mrf.mxu0  ;;  %3431 = vrot.lane.b32.xlu2 %v3310_v13, %s4607_s22 }
 0x4e7   : > { %v3350_v22 = vrot.slane %v3315_v48, 2  ;;  %3573 = vrot.lane.b32.xlu0 %v3315_v48, %s4610_s19  ;;  %3429 = vrot.lane.b32.xlu1 %v3307_v51, %s4607_s22  ;;  %v3479_v51 = vrot.slane %v3418_v14, 5 }
 0x4e9   : > { %v5759_v49 = vsel %vm1968_vm9, %v3349_v57, %v3350_v22  ;;  %v3509_v13 = vsel %vm2107_vm6, %v3479_v51, %v3480_v11 }
 0x4ee   : > { %v3317_v58 = vpop.f32.mrf.mxu0  ;;  %3814 = vrot.lane.b32.xlu2 %v5763_v20, %s4607_s22 }
 0x4ef   : > { %3816 = vrot.lane.b32.xlu0 %v5767_v60, %s4607_s22  ;;  %3575 = vrot.lane.b32.xlu1 %v3317_v58, %s4610_s19 }
 0x4f6   : > { %v3320_v37 = vpop.f32.mrf.mxu0  ;;  %3435 = vrot.lane.b32.xlu2 %v3315_v48, %s4607_s22 }
 0x4f7   : > { %3577 = vrot.lane.b32.xlu0 %v3320_v37, %s4610_s19  ;;  %3433 = vrot.lane.b32.xlu1 %v3312_v7, %s4607_s22  ;;  %v3529_v7 = vadd.f32 %v3509_v13, %v5660_v24 }
 0x4fe   : > { %v3322_v29 = vpop.f32.mrf.mxu0  ;;  %3818 = vrot.lane.b32.xlu2 %v5779_v38, %s4607_s22 }
 0x4ff   : > { %3820 = vrot.lane.b32.xlu0 %v5783_v21, %s4607_s22  ;;  %3579 = vrot.lane.b32.xlu1 %v3322_v29, %s4610_s19 }
 0x506   : > { %v3325_v34 = vpop.f32.mrf.mxu0  ;;  %3439 = vrot.lane.b32.xlu2 %v3320_v37, %s4607_s22 }
 0x507   : > { %3581 = vrot.lane.b32.xlu0 %v3325_v34, %s4610_s19  ;;  %3437 = vrot.lane.b32.xlu1 %v3317_v58, %s4607_s22  ;;  %v3805_v58 = vpop.permute.xlu0 %3804  ;;  %v3422_v34 = vpop.permute.xlu1 %3421 }
 0x508   : > { %v3481_v33 = vrot.slane %v3422_v34, 5 }
 0x50a   : > { %v3508_v24 = vsel %vm2107_vm6, %v3480_v11, %v3481_v33 }
 0x50b   : > { %v3530_v52 = vadd.f32 %v3508_v24, %v5664_v41 }
 0x50e   : > { %v3327_v27 = vpop.f32.mrf.mxu0  ;;  %3822 = vrot.lane.b32.xlu2 %v5795_v62, %s4607_s22 }
 0x50f   : > { %3824 = vrot.lane.b32.xlu0 %v5799_v36, %s4607_s22  ;;  %3583 = vrot.lane.b32.xlu1 %v3327_v27, %s4610_s19 }
 0x516   : > { %v3330_v3 = vpop.f32.mrf.mxu0 }
 0x517   : > { %3826 = vrot.lane.b32.xlu0 %v5808_v39, %s4607_s22  ;;  %3585 = vrot.lane.b32.xlu2 %v3330_v3, %s4610_s19 }
 0x518   : > { %3441 = vrot.lane.b32.xlu1 %v3322_v29, %s4607_s22  ;;  %v3564_v56 = vpop.permute.xlu2 %3563 }
 0x519   : > { %v3621_v57 = vadd.f32 %v3564_v56, %v3529_v7 }
 0x51b   : > { %v3648_v48 = vadd.f32 %v5819_v2, %v3621_v57 }
 0x51d   : > { %v3747_v22 = vmul.f32 %v5602_v8, %v3648_v48 }
 0x51e   : > { %v3332_v9 = vpop.f32.mrf.mxu0 }
 0x51f   : > { %v3862_v37 = vadd.f32 %v3805_v58, %v3747_v22 }
 0x520   : > { %v3424_v29 = vpop.permute.xlu2 %3423 }
 0x521   : > { %v3885_v61 = vadd.f32 %v3862_v37, %v5338_v23  ;;  %v3482_v8 = vrot.slane %v3424_v29, 5 }
 0x523   : > { %v3925_v47 = vpack.c.bf16 %v3885_v61, %v6105_v55  ;;  %v3507_v23 = vsel %vm2107_vm6, %v3481_v33, %v3482_v8 }
 0x524   : > { %v3531_v5 = vadd.f32 %v3507_v23, %v5677_v53  ;;  %v3343_v53 = vrot.slane %v5598_v15, 2 }
 0x525   : > { %4505 = vmatmul.msk.bf16.gmra.mxu2 %vm1297_vm4, %v3925_v47 }
 0x528   : > { %v3807_v26 = vpop.permute.xlu2 %3806 }
 0x530   : > { %v3428_v51 = vpop.permute.xlu2 %3427 }
 0x531   : > { %v3484_v29 = vrot.slane %v3428_v51, 5 }
 0x538   : > { %v3566_v14 = vpop.permute.xlu0 %3565  ;;  %v3811_v57 = vpop.permute.xlu2 %3810 }
 0x539   : > { %v3622_v27 = vadd.f32 %v3566_v14, %v3530_v52 }
 0x53b   : > { %v3649_v55 = vadd.f32 %v5819_v2, %v3622_v27 }
 0x53d   : > { %v3748_v7 = vmul.f32 %v5715_v4, %v3649_v55 }
 0x53f   : > { %v3863_v41 = vadd.f32 %v3807_v26, %v3748_v7 }
 0x540   : > { %v3809_v13 = vpop.permute.xlu0 %3808 }
 0x541   : > { %v3568_v3 = vpop.permute.xlu1 %3567  ;;  %v3886_v37 = vadd.f32 %v3863_v41, %v5363_v40  ;;  %v3370_v40 = vsel %vm1968_vm9, %v3342_v16, %v3343_v53 }
 0x542   : > { %v3623_v56 = vadd.f32 %v3568_v3, %v3531_v5 }
 0x544   : > { %v3650_v11 = vadd.f32 %v5819_v2, %v3623_v56 }
 0x546   : > { %v3749_v48 = vmul.f32 %v5719_v19, %v3650_v11 }
 0x548   : > { %v3864_v22 = vadd.f32 %v3809_v13, %v3749_v48  ;;  %v3570_v9 = vpop.permute.xlu0 %3569 }
 0x549   : > { %v3426_v58 = vpop.permute.xlu1 %3425 }
 0x54a   : > { %v3887_v61 = vadd.f32 %v3864_v22, %v5369_v30  ;;  %v3483_v47 = vrot.slane %v3426_v58, 5  ;;  %v3432_v30 = vpop.permute.xlu2 %3431 }
 0x54b   : > { %v3486_v56 = vrot.slane %v3432_v30, 5 }
 0x54c   : > { %v3926_v34 = vpack.c.bf16 %v3887_v61, %v3886_v37  ;;  %v3506_v4 = vsel %vm2107_vm6, %v3482_v8, %v3483_v47  ;;  %v3505_v19 = vsel %vm2107_vm6, %v3483_v47, %v3484_v29 }
 0x54d   : > { %v3532_v33 = vadd.f32 %v3506_v4, %v5683_v0  ;;  %v3533_v15 = vadd.f32 %v3505_v19, %v3370_v40 }
 0x54e   : > { %4506 = vmatmul.msk.bf16.gmra.mxu2 %vm1297_vm4, %v3926_v34 }
 0x54f   : > { %v3624_v26 = vadd.f32 %v3570_v9, %v3532_v33 }
 0x550   : > { %v3813_v24 = vpop.permute.xlu0 %3812 }
 0x551   : > { %v3651_v52 = vadd.f32 %v5819_v2, %v3624_v26  ;;  %v3572_v14 = vpop.permute.xlu1 %3571 }
 0x552   : > { %v3625_v8 = vadd.f32 %v3572_v14, %v3533_v15  ;;  %v3815_v13 = vpop.permute.xlu2 %3814 }
 0x553   : > { %v3750_v0 = vmul.f32 %v5739_v45, %v3651_v52  ;;  %v3369_v45 = vsel %vm1968_vm9, %v3343_v53, %v3344_v63 }
 0x554   : > { %v3652_v27 = vadd.f32 %v5819_v2, %v3625_v8 }
 0x555   : > { %v3865_v51 = vadd.f32 %v3811_v57, %v3750_v0 }
 0x556   : > { %v3751_v23 = vmul.f32 %v5743_v18, %v3652_v27 }
 0x557   : > { %v3888_v16 = vadd.f32 %v3865_v51, %v5391_v31 }
 0x558   : > { %v3866_v55 = vadd.f32 %v3813_v24, %v3751_v23 }
 0x559   : > { %v3574_v5 = vpop.permute.xlu0 %3573  ;;  %v3430_v1 = vpop.permute.xlu1 %3429 }
 0x55a   : > { %v3889_v3 = vadd.f32 %v3866_v55, %v5397_v50  ;;  %v3485_v7 = vrot.slane %v3430_v1, 5  ;;  %v3436_v63 = vpop.permute.xlu2 %3435 }
 0x55b   : > { %v3488_v19 = vrot.slane %v3436_v63, 5 }
 0x55c   : > { %v3927_v11 = vpack.c.bf16 %v3889_v3, %v3888_v16  ;;  %v3504_v57 = vsel %vm2107_vm6, %v3484_v29, %v3485_v7  ;;  %v3503_v41 = vsel %vm2107_vm6, %v3485_v7, %v3486_v56 }
 0x55d   : > { %v3534_v18 = vadd.f32 %v3504_v57, %v3369_v45  ;;  %v3535_v50 = vadd.f32 %v3503_v41, %v5704_v32 }
 0x55e   : > { %4507 = vmatmul.msk.bf16.gmra.mxu2 %vm1297_vm4, %v3927_v11 }
 0x55f   : > { %v3626_v31 = vadd.f32 %v3574_v5, %v3534_v18 }
 0x561   : > { %v3817_v48 = vpop.permute.xlu0 %3816  ;;  %v3653_v22 = vadd.f32 %v5819_v2, %v3626_v31  ;;  %v3576_v9 = vpop.permute.xlu1 %3575 }
 0x562   : > { %v3627_v17 = vadd.f32 %v3576_v9, %v3535_v50  ;;  %v3819_v15 = vpop.permute.xlu2 %3818 }
 0x563   : > { %v3752_v58 = vmul.f32 %v5763_v20, %v3653_v22 }
 0x564   : > { %v3654_v37 = vadd.f32 %v5819_v2, %v3627_v17 }
 0x565   : > { %v3867_v61 = vadd.f32 %v3815_v13, %v3752_v58 }
 0x566   : > { %v3753_v47 = vmul.f32 %v5767_v60, %v3654_v37 }
 0x567   : > { %v3890_v4 = vadd.f32 %v3867_v61, %v5419_v28 }
 0x568   : > { %v3868_v53 = vadd.f32 %v3817_v48, %v3753_v47 }
 0x569   : > { %v3434_v29 = vpop.permute.xlu1 %3433  ;;  %v3578_v34 = vpop.permute.xlu0 %3577 }
 0x56a   : > { %v3891_v32 = vadd.f32 %v3868_v53, %v5425_v44  ;;  %v3487_v33 = vrot.slane %v3434_v29, 5  ;;  %v3440_v51 = vpop.permute.xlu2 %3439 }
 0x56b   : > { %v3490_v13 = vrot.slane %v3440_v51, 5 }
 0x56c   : > { %v3928_v26 = vpack.c.bf16 %v3891_v32, %v3890_v4  ;;  %v3502_v40 = vsel %vm2107_vm6, %v3486_v56, %v3487_v33  ;;  %v3501_v30 = vsel %vm2107_vm6, %v3487_v33, %v3488_v19 }
 0x56d   : > { %v3536_v20 = vadd.f32 %v3502_v40, %v5711_v35  ;;  %v3537_v24 = vadd.f32 %v3501_v30, %v5728_v12 }
 0x56e   : > { %4508 = vmatmul.msk.bf16.gmra.mxu2 %vm1297_vm4, %v3928_v26 }
 0x56f   : > { %v3628_v60 = vadd.f32 %v3578_v34, %v3536_v20 }
 0x571   : > { %v3655_v28 = vadd.f32 %v5819_v2, %v3628_v60  ;;  %v3580_v44 = vpop.permute.xlu1 %3579  ;;  %v3821_v8 = vpop.permute.xlu0 %3820 }
 0x572   : > { %v3629_v52 = vadd.f32 %v3580_v44, %v3537_v24  ;;  %v3823_v18 = vpop.permute.xlu2 %3822 }
 0x573   : > { %v3754_v14 = vmul.f32 %v5779_v38, %v3655_v28 }
 0x574   : > { %v3656_v0 = vadd.f32 %v5819_v2, %v3629_v52 }
 0x575   : > { %v3869_v27 = vadd.f32 %v3819_v15, %v3754_v14 }
 0x576   : > { %v3755_v35 = vmul.f32 %v5783_v21, %v3656_v0 }
 0x577   : > { %v3892_v5 = vadd.f32 %v3869_v27, %v5447_v25 }
 0x578   : > { %v3870_v23 = vadd.f32 %v3821_v8, %v3755_v35 }
 0x579   : > { %v3438_v55 = vpop.permute.xlu1 %3437  ;;  %v3582_v7 = vpop.permute.xlu0 %3581 }
 0x57a   : > { %v3893_v1 = vadd.f32 %v3870_v23, %v5453_v10  ;;  %v3489_v12 = vrot.slane %v3438_v55, 5  ;;  %v3586_v37 = vpop.permute.xlu2 %3585 }
 0x57c   : > { %v3929_v16 = vpack.c.bf16 %v3893_v1, %v3892_v5  ;;  %v3500_v3 = vsel %vm2107_vm6, %v3488_v19, %v3489_v12  ;;  %v3499_v56 = vsel %vm2107_vm6, %v3489_v12, %v3490_v13 }
 0x57d   : > { %v3538_v38 = vadd.f32 %v3500_v3, %v5735_v42  ;;  %v3539_v11 = vadd.f32 %v3499_v56, %v5752_v6 }
 0x57e   : > { %4509 = vmatmul.msk.bf16.gmra.mxu2 %vm1297_vm4, %v3929_v16 }
 0x57f   : > { %v3630_v21 = vadd.f32 %v3582_v7, %v3538_v38 }
 0x581   : > { %v3657_v25 = vadd.f32 %v5819_v2, %v3630_v21  ;;  %v3584_v10 = vpop.permute.xlu1 %3583  ;;  %v3825_v50 = vpop.permute.xlu0 %3824 }
 0x582   : > { %v3631_v45 = vadd.f32 %v3584_v10, %v3539_v11 }
 0x583   : > { %v3756_v57 = vmul.f32 %v5795_v62, %v3657_v25 }
 0x584   : > { %v3658_v41 = vadd.f32 %v5819_v2, %v3631_v45  ;;  %v5976_v45 = vld [vmem:[%s6085_s17] ss:$0 sm:$0xff] }
 0x585   : > { %v3871_v31 = vadd.f32 %v3823_v18, %v3756_v57 }
 0x586   : > { %v3757_v42 = vmul.f32 %v5799_v36, %v3658_v41 }
 0x587   : > { %v3894_v9 = vadd.f32 %v3871_v31, %v5478_v54 }
 0x588   : > { %v3872_v48 = vadd.f32 %v3825_v50, %v3757_v42 }
 0x589   : > { %v3827_v53 = vpop.permute.xlu0 %3826 }
 0x58a   : > { %v3442_v22 = vpop.permute.xlu1 %3441  ;;  %v3895_v17 = vadd.f32 %v3872_v48, %v5484_v59 }
 0x58b   : > { %v3491_v6 = vrot.slane %v3442_v22, 5 }
 0x58c   : > { %v3930_v58 = vpack.c.bf16 %v3895_v17, %v3894_v9 }
 0x58d   : > { %v3498_v63 = vsel %vm2107_vm6, %v3490_v13, %v3491_v6 }
 0x58e   : > { %v3540_v62 = vadd.f32 %v3498_v63, %v5759_v49  ;;  %4510 = vmatmul.msk.bf16.gmra.mxu2 %vm1297_vm4, %v3930_v58 }
 0x590   : > { %v3632_v61 = vadd.f32 %v3586_v37, %v3540_v62 }
 0x592   : > { %v3659_v36 = vadd.f32 %v5819_v2, %v3632_v61 }
 0x594   : > { %v3758_v47 = vmul.f32 %v5808_v39, %v3659_v36 }
 0x596   : > { %v3873_v29 = vadd.f32 %v3827_v53, %v3758_v47 }
 0x598   : > { %v3896_v54 = vadd.f32 %v3873_v29, %v5496_v43 }
 0x59a   : > { %v3931_v59 = vpack.c.bf16 %v3896_v54, %v3896_v54 }
 0x59e   : > { %4511 = vmatmul.msk.bf16.gmra.mxu2 %vm1297_vm4, %v3931_v59 }
 0x5a8   : > { %v3996_v34 = vpop.f32.mrf.mxu2 }
 0x5a9   : > { %4068 = vrot.lane.b32.xlu1 %v3996_v34, %s4607_s22  ;;  %v4030_v49 = vrot.slane %v3996_v34, 6 }
 0x5b0   : > { %v3998_v4 = vpop.f32.mrf.mxu2 }
 0x5b1   : > { %v4031_v32 = vrot.slane %v3998_v4, 6  ;;  %4070 = vrot.lane.b32.xlu2 %v3998_v4, %s4607_s22 }
 0x5b3   : > { %v4054_v2 = vsel %vm1428_vm3, %v4030_v49, %v4031_v32 }
 0x5b9   : > { %4144 = vrot.lane.b32.xlu2 %v3998_v4, %s4610_s19 }
 0x5d1   : > { %v4001_v39 = vpop.f32.mrf.mxu2 }
 0x5d2   : > { %v4032_v33 = vrot.slane %v4001_v39, 6  ;;  %4072 = vrot.lane.b32.xlu0 %v4001_v39, %s4607_s22 }
 0x5d4   : > { %v5914_v43 = vsel %vm1428_vm3, %v4031_v32, %v4032_v33 }
 0x5d9   : > { %v4003_v19 = vpop.f32.mrf.mxu2 }
 0x5da   : > { %v4033_v26 = vrot.slane %v4003_v19, 6  ;;  %4146 = vrot.lane.b32.xlu0 %v4001_v39, %s4610_s19  ;;  %4074 = vrot.lane.b32.xlu1 %v4003_v19, %s4607_s22 }
 0x5dc   : > { %v5920_v40 = vsel %vm1428_vm3, %v4032_v33, %v4033_v26 }
 0x5e1   : > { %v4006_v20 = vpop.f32.mrf.mxu2 }
 0x5e2   : > { %v4034_v30 = vrot.slane %v4006_v20, 6  ;;  %4148 = vrot.lane.b32.xlu1 %v4003_v19, %s4610_s19  ;;  %4076 = vrot.lane.b32.xlu2 %v4006_v20, %s4607_s22 }
 0x5e4   : > { %v5926_v15 = vsel %vm1428_vm3, %v4033_v26, %v4034_v30 }
 0x5e9   : > { %v4008_v60 = vpop.f32.mrf.mxu2 }
 0x5ea   : > { %v4035_v24 = vrot.slane %v4008_v60, 6  ;;  %4150 = vrot.lane.b32.xlu2 %v4006_v20, %s4610_s19  ;;  %4078 = vrot.lane.b32.xlu0 %v4008_v60, %s4607_s22 }
 0x5ec   : > { %v5932_v28 = vsel %vm1428_vm3, %v4034_v30, %v4035_v24 }
 0x5f1   : > { %v4011_v44 = vpop.f32.mrf.mxu2 }
 0x5f2   : > { %v4036_v52 = vrot.slane %v4011_v44, 6  ;;  %4152 = vrot.lane.b32.xlu0 %v4008_v60, %s4610_s19  ;;  %4080 = vrot.lane.b32.xlu1 %v4011_v44, %s4607_s22 }
 0x5f4   : > { %v5938_v14 = vsel %vm1428_vm3, %v4035_v24, %v4036_v52 }
 0x5f9   : > { %v4013_v8 = vpop.f32.mrf.mxu2 }
 0x5fa   : > { %v4037_v0 = vrot.slane %v4013_v8, 6  ;;  %4154 = vrot.lane.b32.xlu1 %v4011_v44, %s4610_s19  ;;  %4082 = vrot.lane.b32.xlu2 %v4013_v8, %s4607_s22 }
 0x5fc   : > { %v5944_v27 = vsel %vm1428_vm3, %v4036_v52, %v4037_v0 }
 0x601   : > { %v4016_v35 = vpop.f32.mrf.mxu2 }
 0x602   : > { %v4038_v51 = vrot.slane %v4016_v35, 6  ;;  %4156 = vrot.lane.b32.xlu2 %v4013_v8, %s4610_s19  ;;  %4084 = vrot.lane.b32.xlu0 %v4016_v35, %s4607_s22 }
 0x604   : > { %v5950_v23 = vsel %vm1428_vm3, %v4037_v0, %v4038_v51 }
 0x609   : > { %v4018_v55 = vpop.f32.mrf.mxu2 }
 0x60a   : > { %v4039_v5 = vrot.slane %v4018_v55, 6  ;;  %4158 = vrot.lane.b32.xlu0 %v4016_v35, %s4610_s19  ;;  %4086 = vrot.lane.b32.xlu1 %v4018_v55, %s4607_s22 }
 0x60b   : > { %v4071_v3 = vpop.permute.xlu2 %4070 }
 0x60c   : > { %v5956_v1 = vsel %vm1428_vm3, %v4038_v51, %v4039_v5  ;;  %v4108_v21 = vrot.slane %v4071_v3, 7 }
 0x611   : > { %v4021_v12 = vpop.f32.mrf.mxu2 }
 0x612   : > { %v4040_v13 = vrot.slane %v4021_v12, 6  ;;  %4160 = vrot.lane.b32.xlu1 %v4018_v55, %s4610_s19  ;;  %4088 = vrot.lane.b32.xlu2 %v4021_v12, %s4607_s22 }
 0x613   : > { %v4145_v18 = vpop.permute.xlu2 %4144 }
 0x614   : > { %v5962_v16 = vsel %vm1428_vm3, %v4039_v5, %v4040_v13 }
 0x619   : > { %v4023_v38 = vpop.f32.mrf.mxu2 }
 0x61a   : > { %v4041_v7 = vrot.slane %v4023_v38, 6  ;;  %4162 = vrot.lane.b32.xlu2 %v4021_v12, %s4610_s19  ;;  %4090 = vrot.lane.b32.xlu0 %v4023_v38, %s4607_s22 }
 0x61b   : > { %v4069_v56 = vpop.permute.xlu1 %4068 }
 0x61c   : > { %v4107_v11 = vrot.slane %v4069_v56, 7  ;;  %v5968_v25 = vsel %vm1428_vm3, %v4040_v13, %v4041_v7 }
 0x61e   : > { %v4131_v10 = vsel %vm1567_vm2, %v4107_v11, %v4108_v21 }
 0x61f   : > { %v4132_v57 = vadd.f32 %v4131_v10, %v4054_v2 }
 0x621   : > { %v4180_v41 = vadd.f32 %v4145_v18, %v4132_v57  ;;  %v4026_v31 = vpop.f32.mrf.mxu2 }
 0x622   : > { %v4042_v42 = vrot.slane %v4026_v31, 6  ;;  %4164 = vrot.lane.b32.xlu0 %v4023_v38, %s4610_s19  ;;  %4092 = vrot.lane.b32.xlu1 %v4026_v31, %s4607_s22 }
 0x623   : > { %v4196_v50 = vadd.f32 %v5976_v45, %v4180_v41 }
 0x624   : > { %v5988_v48 = vsel %vm1428_vm3, %v4041_v7, %v4042_v42 }
 0x625   : > { %4208 = vst.msk [vmem:[%s5981_s24] sm:$0xff] %vm1297_vm4, %v4196_v50 }
 0x629   : > { %v4028_v22 = vpop.f32.mrf.mxu2 }
 0x62a   : > { %4166 = vrot.lane.b32.xlu1 %v4026_v31, %s4610_s19 }
 0x63c   : > { %v4077_v6 = vpop.permute.xlu2 %4076 }
 0x63d   : > { %v4111_v61 = vrot.slane %v4077_v6, 7 }
 0x644   : > { %v4073_v9 = vpop.permute.xlu0 %4072  ;;  %v4151_v34 = vpop.permute.xlu2 %4150 }
 0x645   : > { %v4109_v17 = vrot.slane %v4073_v9, 7 }
 0x647   : > { %v4130_v58 = vsel %vm1567_vm2, %v4108_v21, %v4109_v17 }
 0x648   : > { %v4133_v63 = vadd.f32 %v4130_v58, %v5914_v43 }
 0x64c   : > { %v4075_v62 = vpop.permute.xlu1 %4074  ;;  %v4147_v37 = vpop.permute.xlu0 %4146 }
 0x64d   : > { %v4110_v36 = vrot.slane %v4075_v62, 7  ;;  %v4181_v47 = vadd.f32 %v4147_v37, %v4133_v63 }
 0x64f   : > { %v4128_v53 = vsel %vm1567_vm2, %v4110_v36, %v4111_v61  ;;  %v4197_v29 = vadd.f32 %v5976_v45, %v4181_v47  ;;  %v4129_v59 = vsel %vm1567_vm2, %v4109_v17, %v4110_v36 }
 0x650   : > { %v4135_v54 = vadd.f32 %v4128_v53, %v5926_v15  ;;  %v4134_v49 = vadd.f32 %v4129_v59, %v5920_v40 }
 0x651   : > { %4209 = vst.msk [vmem:[%s5981_s24 + $0x8] sm:$0xff] %vm1297_vm4, %v4197_v29 }
 0x652   : > { %v4183_v4 = vadd.f32 %v4151_v34, %v4135_v54 }
 0x654   : > { %v4199_v32 = vadd.f32 %v5976_v45, %v4183_v4  ;;  %v4149_v2 = vpop.permute.xlu1 %4148  ;;  %v4083_v26 = vpop.permute.xlu2 %4082 }
 0x655   : > { %v4182_v39 = vadd.f32 %v4149_v2, %v4134_v49  ;;  %v4114_v60 = vrot.slane %v4083_v26, 7 }
 0x656   : > { %4211 = vst.msk [vmem:[%s5981_s24 + $0x18] sm:$0xff] %vm1297_vm4, %v4199_v32 }
 0x657   : > { %v4198_v33 = vadd.f32 %v5976_v45, %v4182_v39 }
 0x659   : > { %4210 = vst.msk [vmem:[%s5981_s24 + $0x10] sm:$0xff] %vm1297_vm4, %v4198_v33 }
 0x65c   : > { %v4079_v43 = vpop.permute.xlu0 %4078  ;;  %v4157_v51 = vpop.permute.xlu2 %4156 }
 0x65d   : > { %v4112_v19 = vrot.slane %v4079_v43, 7 }
 0x65f   : > { %v4127_v20 = vsel %vm1567_vm2, %v4111_v61, %v4112_v19 }
 0x660   : > { %v4136_v30 = vadd.f32 %v4127_v20, %v5932_v28 }
 0x664   : > { %v4081_v40 = vpop.permute.xlu1 %4080  ;;  %v4153_v15 = vpop.permute.xlu0 %4152 }
 0x665   : > { %v4113_v24 = vrot.slane %v4081_v40, 7  ;;  %v4184_v44 = vadd.f32 %v4153_v15, %v4136_v30 }
 0x667   : > { %v4125_v52 = vsel %vm1567_vm2, %v4113_v24, %v4114_v60  ;;  %v4200_v8 = vadd.f32 %v5976_v45, %v4184_v44  ;;  %v4126_v35 = vsel %vm1567_vm2, %v4112_v19, %v4113_v24 }
 0x668   : > { %v4138_v0 = vadd.f32 %v4125_v52, %v5944_v27  ;;  %v4137_v55 = vadd.f32 %v4126_v35, %v5938_v14 }
 0x669   : > { %4212 = vst.msk [vmem:[%s5981_s24 + $0x20] sm:$0xff] %vm1297_vm4, %v4200_v8 }
 0x66a   : > { %v4186_v28 = vadd.f32 %v4157_v51, %v4138_v0 }
 0x66c   : > { %v4202_v5 = vadd.f32 %v5976_v45, %v4186_v28  ;;  %v4155_v12 = vpop.permute.xlu1 %4154  ;;  %v4089_v7 = vpop.permute.xlu2 %4088 }
 0x66d   : > { %v4185_v13 = vadd.f32 %v4155_v12, %v4137_v55  ;;  %v4117_v10 = vrot.slane %v4089_v7, 7 }
 0x66e   : > { %4214 = vst.msk [vmem:[%s5981_s24 + $0x30] sm:$0xff] %vm1297_vm4, %v4202_v5 }
 0x66f   : > { %v4201_v3 = vadd.f32 %v5976_v45, %v4185_v13 }
 0x671   : > { %4213 = vst.msk [vmem:[%s5981_s24 + $0x28] sm:$0xff] %vm1297_vm4, %v4201_v3 }
 0x674   : > { %v4085_v27 = vpop.permute.xlu0 %4084  ;;  %v4163_v22 = vpop.permute.xlu2 %4162 }
 0x675   : > { %v4115_v38 = vrot.slane %v4085_v27, 7 }
 0x677   : > { %v4124_v56 = vsel %vm1567_vm2, %v4114_v60, %v4115_v38 }
 0x678   : > { %v4139_v21 = vadd.f32 %v4124_v56, %v5950_v23 }
 0x67c   : > { %v4087_v14 = vpop.permute.xlu1 %4086  ;;  %v4159_v11 = vpop.permute.xlu0 %4158 }
 0x67d   : > { %v4116_v57 = vrot.slane %v4087_v14, 7  ;;  %v4187_v18 = vadd.f32 %v4159_v11, %v4139_v21 }
 0x67f   : > { %v4122_v41 = vsel %vm1567_vm2, %v4116_v57, %v4117_v10  ;;  %v4203_v31 = vadd.f32 %v5976_v45, %v4187_v18  ;;  %v4123_v50 = vsel %vm1567_vm2, %v4115_v38, %v4116_v57 }
 0x680   : > { %v4141_v42 = vadd.f32 %v4122_v41, %v5962_v16  ;;  %v4140_v9 = vadd.f32 %v4123_v50, %v5956_v1 }
 0x681   : > { %4215 = vst.msk [vmem:[%s5981_s24 + $0x38] sm:$0xff] %vm1297_vm4, %v4203_v31 }
 0x682   : > { %v4189_v23 = vadd.f32 %v4163_v22, %v4141_v42 }
 0x684   : > { %v4205_v17 = vadd.f32 %v5976_v45, %v4189_v23  ;;  %v4161_v6 = vpop.permute.xlu1 %4160 }
 0x685   : > { %v4188_v58 = vadd.f32 %v4161_v6, %v4140_v9 }
 0x686   : > { %4217 = vst.msk [vmem:[%s5981_s24 + $0x48] sm:$0xff] %vm1297_vm4, %v4205_v17 }
 0x687   : > { %v4204_v63 = vadd.f32 %v5976_v45, %v4188_v58 }
 0x689   : > { %4216 = vst.msk [vmem:[%s5981_s24 + $0x40] sm:$0xff] %vm1297_vm4, %v4204_v63 }
 0x68c   : > { %v4091_v16 = vpop.permute.xlu0 %4090 }
 0x68d   : > { %v4118_v62 = vrot.slane %v4091_v16, 7 }
 0x68f   : > { %v4121_v37 = vsel %vm1567_vm2, %v4117_v10, %v4118_v62 }
 0x690   : > { %v4142_v61 = vadd.f32 %v4121_v37, %v5968_v25 }
 0x694   : > { %v4093_v1 = vpop.permute.xlu1 %4092  ;;  %v4165_v36 = vpop.permute.xlu0 %4164 }
 0x695   : > { %v4119_v47 = vrot.slane %v4093_v1, 7  ;;  %v4190_v53 = vadd.f32 %v4165_v36, %v4142_v61 }
 0x697   : > { %v4206_v29 = vadd.f32 %v5976_v45, %v4190_v53  ;;  %v4120_v54 = vsel %vm1567_vm2, %v4118_v62, %v4119_v47 }
 0x698   : > { %v4143_v59 = vadd.f32 %v4120_v54, %v5988_v48 }
 0x699   : > { %4218 = vst.msk [vmem:[%s5981_s24 + $0x50] sm:$0xff] %vm1297_vm4, %v4206_v29 }
 0x69c   : > { %v4167_v34 = vpop.permute.xlu1 %4166 }
 0x69d   : > { %v4191_v4 = vadd.f32 %v4167_v34, %v4143_v59 }
 0x69f   : > { %v4207_v49 = vadd.f32 %v5976_v45, %v4191_v4 }
 0x6a1   : > { %4219 = vst.msk [vmem:[%s5981_s24 + $0x58] sm:$0xff] %vm1297_vm4, %v4207_v49 }
 0x6a2 PF: > { %s28_s29 = sadd.s32 1, %s4605_s29   ;;  %s6113_s22 = sld [smem:[#allocation2_spill]] }
 0x6a3   : > { %p25_p5 = scmp.ge.s32.totalorder %s28_s29, 4   ;;  %s6114_s27 = smov %s4601_s28 }
 0x6a5   :  { %27 = sbr.rel (!%p25_p5) target bundleno = 4 (0x4), region = 125 }
 0x6a8   : > { %s6115_s28 = smov %s6113_s22 }

</bundles_post_ra>
